<compile_context>
chip_gen: v7x
topology: tpu7x:2x2x1
jax: 0.10.0
libtpu: 0.0.40
codegen_flags: <defaults>
</compile_context>

<pallas_src>
import functools

import numpy as np

import jax
import jax.numpy as jnp
from jax.experimental import pallas as pl
from jax.experimental.pallas import tpu as pltpu


# --------------------------------------------------------------------------
# Fused Pallas kernel
# --------------------------------------------------------------------------
def _mish(x):
    # mish(x) = x * tanh(softplus(x)) = x * n / (n + 2),  n = e^x * (e^x + 2)
    # Clamp at 20: for x > 20, tanh(softplus(x)) == 1 to f32 precision.
    t = jnp.exp(jnp.minimum(x, 20.0))
    n = t * (t + 2.0)
    return x * n * pl.reciprocal(n + 2.0, approx=True)


def _conv_taps(x, w_ref, b_ref, g_ref, K):
    """y = sum_k W_k @ (x @ G_k) + b  -- stride & zero-padding folded into G_k.

    x     : (Cin, L_in)   value, length on lanes
    w_ref : (K, Cout, Cin)
    b_ref : (Cout, 1)
    g_ref : (K, L_in, L_out)  constant 0/1 gather matrices
    """
    acc = None
    for k in range(K):  # static unroll over conv taps
        gathered = jnp.dot(x, g_ref[k], preferred_element_type=jnp.float32)
        part = jnp.dot(w_ref[k], gathered, preferred_element_type=jnp.float32)
        acc = part if acc is None else acc + part
    return acc + b_ref[...]


def encoder_kernel(x_ref,
                   w1_ref, b1_ref, g1_ref,
                   w2_ref, b2_ref, g2_ref,
                   w3_ref, b3_ref, g3_ref,
                   wa_ref, ba_ref, wb_ref, bb_ref,
                   o_ref):
    x = x_ref[0]                                             # (Cin, L)
    # stem: Conv(4,s2,p1)+Mish -> Conv(4,s2,p1)+Mish -> Conv(3,p1)+Mish
    h = _mish(_conv_taps(x, w1_ref, b1_ref, g1_ref, 4))      # (C/2, L/2)
    h = _mish(_conv_taps(h, w2_ref, b2_ref, g2_ref, 4))      # (C/2, L/4)
    h = _mish(_conv_taps(h, w3_ref, b3_ref, g3_ref, 3))      # (C,   L/4)
    # 3 x ResBlock: x + Conv1x1(Mish(Conv3(Mish(x))))
    # (residual convs share g3: same K=3 / stride=1 / pad=1 / length)
    for r in range(3):
        hm = _mish(h)
        acc = None
        for k in range(3):
            gathered = jnp.dot(hm, g3_ref[k],
                               preferred_element_type=jnp.float32)
            part = jnp.dot(wa_ref[r * 3 + k], gathered,
                           preferred_element_type=jnp.float32)
            acc = part if acc is None else acc + part
        a = _mish(acc + ba_ref[r])
        h = h + jnp.dot(wb_ref[r], a,
                        preferred_element_type=jnp.float32) + bb_ref[r]
    o_ref[0] = jnp.maximum(h, 0.0)                           # final ReLU


def _rep_spec(arr):
    # whole-array block, same (only) block for every grid step
    n = arr.ndim
    return pl.BlockSpec(arr.shape, lambda b, _n=n: (0,) * _n)


@functools.partial(jax.jit, static_argnums=(2, 3))
def encoder_forward(x, consts, channel, l_out):
    """x: (B, Cin, L) NCL float32; consts: pre-baked weights/gather matrices."""
    B, Cin, L = x.shape
    in_specs = [pl.BlockSpec((1, Cin, L), lambda b: (b, 0, 0))]
    in_specs += [_rep_spec(c) for c in consts]
    return pl.pallas_call(
        encoder_kernel,
        out_shape=jax.ShapeDtypeStruct((B, channel, l_out), jnp.float32),
        grid=(B,),
        in_specs=in_specs,
        out_specs=pl.BlockSpec((1, channel, l_out), lambda b: (b, 0, 0)),
        compiler_params=pltpu.CompilerParams(
            dimension_semantics=("parallel",)),
    )(x, *consts)


# --------------------------------------------------------------------------
# One-time parameter preparation (layout pre-baking, outside the hot path)
# --------------------------------------------------------------------------
def _make_gather(L_in, K, stride, pad):
    """G[k, j, t] = 1  iff  j == stride*t + k - pad (zero-padding otherwise)."""
    L_out = (L_in + 2 * pad - K) // stride + 1
    G = np.zeros((K, L_in, L_out), np.float32)
    for k in range(K):
        src = np.arange(L_out) * stride + k - pad
        valid = (src >= 0) & (src < L_in)
        G[k, src[valid], np.arange(L_out)[valid]] = 1.0
    return jnp.asarray(G), L_out


def prepare_params(params, channel, L):
    def wt(w):  # PyTorch Conv1d weight (Cout, Cin, K) -> (K, Cout, Cin)
        return jnp.transpose(jnp.asarray(w, jnp.float32), (2, 0, 1))

    def bt(b):
        return jnp.asarray(b, jnp.float32).reshape(-1, 1)

    g1, L1 = _make_gather(L, 4, 2, 1)
    g2, L2 = _make_gather(L1, 4, 2, 1)
    g3, L3 = _make_gather(L2, 3, 1, 1)

    # stacked ResBlock weights: (9, C, C) indexed by r*3+k, biases (3, C, 1)
    wa = jnp.concatenate([wt(params[f"res{r}a"][0]) for r in range(3)], axis=0)
    ba = jnp.stack([bt(params[f"res{r}a"][1]) for r in range(3)], axis=0)
    wb = jnp.stack([jnp.asarray(params[f"res{r}b"][0], jnp.float32)[:, :, 0]
                    for r in range(3)], axis=0)               # K=1 -> (3, C, C)
    bb = jnp.stack([bt(params[f"res{r}b"][1]) for r in range(3)], axis=0)

    consts = (wt(params["conv1"][0]), bt(params["conv1"][1]), g1,
              wt(params["conv2"][0]), bt(params["conv2"][1]), g2,
              wt(params["conv3"][0]), bt(params["conv3"][1]), g3,
              wa, ba, wb, bb)
    return consts, channel, L3


# --------------------------------------------------------------------------
# Deterministic parameter init (PyTorch weight layouts)
# --------------------------------------------------------------------------
def init_params(key, in_ch, ch):
    keys = iter(jax.random.split(key, 24))

    def w(shape):
        return jax.random.normal(next(keys), shape, jnp.float32) * 0.1

    p = {}
    p["conv1"] = (w((ch // 2, in_ch, 4)), w((ch // 2,)))      # Conv1d k4 s2 p1
    p["conv2"] = (w((ch // 2, ch // 2, 4)), w((ch // 2,)))    # Conv1d k4 s2 p1
    p["conv3"] = (w((ch, ch // 2, 3)), w((ch,)))              # Conv1d k3 p1
    for r in range(3):
        p[f"res{r}a"] = (w((ch, ch, 3)), w((ch,)))            # Conv1d k3 p1
        p[f"res{r}b"] = (w((ch, ch, 1)), w((ch,)))            # Conv1d k1
    return p


# --------------------------------------------------------------------------
# Pure NumPy reference (direct PyTorch semantics) for verification
# --------------------------------------------------------------------------
def _np_mish(x):
    return x * np.tanh(np.logaddexp(0.0, x))


def _np_conv1d(x, W, b, stride=1, pad=0):
    Cout, Cin, K = W.shape
    L = x.shape[1]
    Lout = (L + 2 * pad - K) // stride + 1
    xp = np.pad(x, ((0, 0), (pad, pad)))
    y = np.zeros((Cout, Lout))
    for t in range(Lout):
        y[:, t] = np.einsum("oik,ik->o", W, xp[:, t * stride:t * stride + K]) + b
    return y


def _np_encoder(x, p):
    g = lambda n: (np.asarray(p[n][0], np.float64), np.asarray(p[n][1], np.float64))
    h = _np_mish(_np_conv1d(x, *g("conv1"), stride=2, pad=1))
    h = _np_mish(_np_conv1d(h, *g("conv2"), stride=2, pad=1))
    h = _np_mish(_np_conv1d(h, *g("conv3"), stride=1, pad=1))
    for r in range(3):
        a = _np_conv1d(_np_mish(h), *g(f"res{r}a"), stride=1, pad=1)
        h = _np_conv1d(_np_mish(a), *g(f"res{r}b"), stride=1, pad=0) + h
    return np.maximum(h, 0.0)


# --------------------------------------------------------------------------
if __name__ == "__main__":
    key = jax.random.PRNGKey(0)
    kx, kp = jax.random.split(key)

    # Encoder(in_channel=4, channel=32, n_res_block=2, n_res_channel=32, stride=2)
    # (the PyTorch module hard-codes 3 ResBlocks on `channel`, so
    #  n_res_block / n_res_channel don't change the graph)
    B, in_ch, ch, L = 2, 4, 32, 64
    x = jax.random.normal(kx, (B, in_ch, L), jnp.float32)     # NCL like PyTorch
    params = init_params(kp, in_ch, ch)
    consts, channel, l_out = prepare_params(params, ch, L)

    out = encoder_forward(x, consts, channel, l_out)
    out = jax.block_until_ready(out)
    assert out.shape == (B, ch, L // 4), out.shape

    # Verify against a direct NumPy implementation of the PyTorch semantics.
    x_np = np.asarray(x, np.float64)
    ref = np.stack([_np_encoder(x_np[b], params) for b in range(B)], axis=0)
    np.testing.assert_allclose(np.asarray(out, np.float64), ref,
                               rtol=2e-2, atol=2e-2)

    print("KERNEL_OK")
</pallas_src>

<mosaic_0001>
module attributes {stable_mosaic.version = 11 : i64} {
  func.func @encoder_kernel(%arg0: i32, %arg1: memref<1x4x64xf32, #tpu.memory_space<vmem>>, %arg2: memref<4x16x4xf32, #tpu.memory_space<vmem>>, %arg3: memref<16x1xf32, #tpu.memory_space<vmem>>, %arg4: memref<4x64x32xf32, #tpu.memory_space<vmem>>, %arg5: memref<4x16x16xf32, #tpu.memory_space<vmem>>, %arg6: memref<16x1xf32, #tpu.memory_space<vmem>>, %arg7: memref<4x32x16xf32, #tpu.memory_space<vmem>>, %arg8: memref<3x32x16xf32, #tpu.memory_space<vmem>>, %arg9: memref<32x1xf32, #tpu.memory_space<vmem>>, %arg10: memref<3x16x16xf32, #tpu.memory_space<vmem>>, %arg11: memref<9x32x32xf32, #tpu.memory_space<vmem>>, %arg12: memref<3x32x1xf32, #tpu.memory_space<vmem>>, %arg13: memref<3x32x32xf32, #tpu.memory_space<vmem>>, %arg14: memref<3x32x1xf32, #tpu.memory_space<vmem>>, %arg15: memref<1x32x16xf32, #tpu.memory_space<vmem>>) attributes {dimension_semantics = [#tpu.dimension_semantics<parallel>], iteration_bounds = array<i64: 2>, scalar_prefetch = 0 : i64, scratch_operands = 0 : i64, tpu.core_type = #tpu.core_type<tc>, window_params = [{transform_indices = @transform_0, window_bounds = array<i64: 1, 4, 64>}, {pipeline_mode = #tpu.pipeline_mode<synchronous>, transform_indices = @transform_1, window_bounds = array<i64: 4, 16, 4>}, {pipeline_mode = #tpu.pipeline_mode<synchronous>, transform_indices = @transform_2, window_bounds = array<i64: 16, 1>}, {pipeline_mode = #tpu.pipeline_mode<synchronous>, transform_indices = @transform_3, window_bounds = array<i64: 4, 64, 32>}, {pipeline_mode = #tpu.pipeline_mode<synchronous>, transform_indices = @transform_4, window_bounds = array<i64: 4, 16, 16>}, {pipeline_mode = #tpu.pipeline_mode<synchronous>, transform_indices = @transform_5, window_bounds = array<i64: 16, 1>}, {pipeline_mode = #tpu.pipeline_mode<synchronous>, transform_indices = @transform_6, window_bounds = array<i64: 4, 32, 16>}, {pipeline_mode = #tpu.pipeline_mode<synchronous>, transform_indices = @transform_7, window_bounds = array<i64: 3, 32, 16>}, {pipeline_mode = #tpu.pipeline_mode<synchronous>, transform_indices = @transform_8, window_bounds = array<i64: 32, 1>}, {pipeline_mode = #tpu.pipeline_mode<synchronous>, transform_indices = @transform_9, window_bounds = array<i64: 3, 16, 16>}, {pipeline_mode = #tpu.pipeline_mode<synchronous>, transform_indices = @transform_10, window_bounds = array<i64: 9, 32, 32>}, {pipeline_mode = #tpu.pipeline_mode<synchronous>, transform_indices = @transform_11, window_bounds = array<i64: 3, 32, 1>}, {pipeline_mode = #tpu.pipeline_mode<synchronous>, transform_indices = @transform_12, window_bounds = array<i64: 3, 32, 32>}, {pipeline_mode = #tpu.pipeline_mode<synchronous>, transform_indices = @transform_13, window_bounds = array<i64: 3, 32, 1>}, {transform_indices = @transform_14, window_bounds = array<i64: 1, 32, 16>}]} {
    %c0 = arith.constant 0 : index
    %c0_0 = arith.constant 0 : index
    %c0_1 = arith.constant 0 : index
    %0 = vector.load %arg1[%c0, %c0_0, %c0_1] : memref<1x4x64xf32, #tpu.memory_space<vmem>>, vector<1x4x64xf32>
    %1 = vector.shape_cast %0 : vector<1x4x64xf32> to vector<4x64xf32>
    %c0_2 = arith.constant 0 : index
    %c0_3 = arith.constant 0 : index
    %c0_4 = arith.constant 0 : index
    %2 = vector.load %arg4[%c0_2, %c0_3, %c0_4] : memref<4x64x32xf32, #tpu.memory_space<vmem>>, vector<1x64x32xf32>
    %3 = vector.shape_cast %2 : vector<1x64x32xf32> to vector<64x32xf32>
    %cst = arith.constant dense<0.000000e+00> : vector<4x32xf32>
    %4 = tpu.matmul %1, %3, %cst {dimension_numbers = #tpu.dot_dimension_numbers<[1], [0], [0], [1], [0, 0, 1, 1], [], []>} : vector<4x64xf32>, vector<64x32xf32>, vector<4x32xf32> -> vector<4x32xf32>
    %c0_5 = arith.constant 0 : index
    %c0_6 = arith.constant 0 : index
    %c0_7 = arith.constant 0 : index
    %5 = vector.load %arg2[%c0_5, %c0_6, %c0_7] : memref<4x16x4xf32, #tpu.memory_space<vmem>>, vector<1x16x4xf32>
    %6 = vector.shape_cast %5 : vector<1x16x4xf32> to vector<16x4xf32>
    %cst_8 = arith.constant dense<0.000000e+00> : vector<16x32xf32>
    %7 = tpu.matmul %6, %4, %cst_8 {dimension_numbers = #tpu.dot_dimension_numbers<[1], [0], [0], [1], [0, 0, 1, 1], [], []>} : vector<16x4xf32>, vector<4x32xf32>, vector<16x32xf32> -> vector<16x32xf32>
    %c1 = arith.constant 1 : index
    %c0_9 = arith.constant 0 : index
    %c0_10 = arith.constant 0 : index
    %8 = vector.load %arg4[%c1, %c0_9, %c0_10] : memref<4x64x32xf32, #tpu.memory_space<vmem>>, vector<1x64x32xf32>
    %9 = vector.shape_cast %8 : vector<1x64x32xf32> to vector<64x32xf32>
    %cst_11 = arith.constant dense<0.000000e+00> : vector<4x32xf32>
    %10 = tpu.matmul %1, %9, %cst_11 {dimension_numbers = #tpu.dot_dimension_numbers<[1], [0], [0], [1], [0, 0, 1, 1], [], []>} : vector<4x64xf32>, vector<64x32xf32>, vector<4x32xf32> -> vector<4x32xf32>
    %c1_12 = arith.constant 1 : index
    %c0_13 = arith.constant 0 : index
    %c0_14 = arith.constant 0 : index
    %11 = vector.load %arg2[%c1_12, %c0_13, %c0_14] : memref<4x16x4xf32, #tpu.memory_space<vmem>>, vector<1x16x4xf32>
    %12 = vector.shape_cast %11 : vector<1x16x4xf32> to vector<16x4xf32>
    %cst_15 = arith.constant dense<0.000000e+00> : vector<16x32xf32>
    %13 = tpu.matmul %12, %10, %cst_15 {dimension_numbers = #tpu.dot_dimension_numbers<[1], [0], [0], [1], [0, 0, 1, 1], [], []>} : vector<16x4xf32>, vector<4x32xf32>, vector<16x32xf32> -> vector<16x32xf32>
    %14 = arith.addf %7, %13 : vector<16x32xf32>
    %c2 = arith.constant 2 : index
    %c0_16 = arith.constant 0 : index
    %c0_17 = arith.constant 0 : index
    %15 = vector.load %arg4[%c2, %c0_16, %c0_17] : memref<4x64x32xf32, #tpu.memory_space<vmem>>, vector<1x64x32xf32>
    %16 = vector.shape_cast %15 : vector<1x64x32xf32> to vector<64x32xf32>
    %cst_18 = arith.constant dense<0.000000e+00> : vector<4x32xf32>
    %17 = tpu.matmul %1, %16, %cst_18 {dimension_numbers = #tpu.dot_dimension_numbers<[1], [0], [0], [1], [0, 0, 1, 1], [], []>} : vector<4x64xf32>, vector<64x32xf32>, vector<4x32xf32> -> vector<4x32xf32>
    %c2_19 = arith.constant 2 : index
    %c0_20 = arith.constant 0 : index
    %c0_21 = arith.constant 0 : index
    %18 = vector.load %arg2[%c2_19, %c0_20, %c0_21] : memref<4x16x4xf32, #tpu.memory_space<vmem>>, vector<1x16x4xf32>
    %19 = vector.shape_cast %18 : vector<1x16x4xf32> to vector<16x4xf32>
    %cst_22 = arith.constant dense<0.000000e+00> : vector<16x32xf32>
    %20 = tpu.matmul %19, %17, %cst_22 {dimension_numbers = #tpu.dot_dimension_numbers<[1], [0], [0], [1], [0, 0, 1, 1], [], []>} : vector<16x4xf32>, vector<4x32xf32>, vector<16x32xf32> -> vector<16x32xf32>
    %21 = arith.addf %14, %20 : vector<16x32xf32>
    %c3 = arith.constant 3 : index
    %c0_23 = arith.constant 0 : index
    %c0_24 = arith.constant 0 : index
    %22 = vector.load %arg4[%c3, %c0_23, %c0_24] : memref<4x64x32xf32, #tpu.memory_space<vmem>>, vector<1x64x32xf32>
    %23 = vector.shape_cast %22 : vector<1x64x32xf32> to vector<64x32xf32>
    %cst_25 = arith.constant dense<0.000000e+00> : vector<4x32xf32>
    %24 = tpu.matmul %1, %23, %cst_25 {dimension_numbers = #tpu.dot_dimension_numbers<[1], [0], [0], [1], [0, 0, 1, 1], [], []>} : vector<4x64xf32>, vector<64x32xf32>, vector<4x32xf32> -> vector<4x32xf32>
    %c3_26 = arith.constant 3 : index
    %c0_27 = arith.constant 0 : index
    %c0_28 = arith.constant 0 : index
    %25 = vector.load %arg2[%c3_26, %c0_27, %c0_28] : memref<4x16x4xf32, #tpu.memory_space<vmem>>, vector<1x16x4xf32>
    %26 = vector.shape_cast %25 : vector<1x16x4xf32> to vector<16x4xf32>
    %cst_29 = arith.constant dense<0.000000e+00> : vector<16x32xf32>
    %27 = tpu.matmul %26, %24, %cst_29 {dimension_numbers = #tpu.dot_dimension_numbers<[1], [0], [0], [1], [0, 0, 1, 1], [], []>} : vector<16x4xf32>, vector<4x32xf32>, vector<16x32xf32> -> vector<16x32xf32>
    %28 = arith.addf %21, %27 : vector<16x32xf32>
    %c0_30 = arith.constant 0 : index
    %c0_31 = arith.constant 0 : index
    %29 = vector.load %arg3[%c0_30, %c0_31] : memref<16x1xf32, #tpu.memory_space<vmem>>, vector<16x1xf32>
    %30 = vector.broadcast %29 : vector<16x1xf32> to vector<16x32xf32>
    %31 = arith.addf %28, %30 : vector<16x32xf32>
    %cst_32 = arith.constant 2.000000e+01 : f32
    %32 = vector.broadcast %cst_32 : f32 to vector<16x32xf32>
    %33 = arith.minimumf %31, %32 : vector<16x32xf32>
    %34 = math.exp %33 : vector<16x32xf32>
    %cst_33 = arith.constant 2.000000e+00 : f32
    %35 = vector.broadcast %cst_33 : f32 to vector<16x32xf32>
    %36 = arith.addf %34, %35 : vector<16x32xf32>
    %37 = arith.mulf %34, %36 : vector<16x32xf32>
    %38 = arith.mulf %31, %37 : vector<16x32xf32>
    %cst_34 = arith.constant 2.000000e+00 : f32
    %39 = vector.broadcast %cst_34 : f32 to vector<16x32xf32>
    %40 = arith.addf %37, %39 : vector<16x32xf32>
    %41 = tpu.reciprocal %40 {approx = true} : vector<16x32xf32> -> vector<16x32xf32>
    %42 = arith.mulf %38, %41 : vector<16x32xf32>
    %c0_35 = arith.constant 0 : index
    %c0_36 = arith.constant 0 : index
    %c0_37 = arith.constant 0 : index
    %43 = vector.load %arg7[%c0_35, %c0_36, %c0_37] : memref<4x32x16xf32, #tpu.memory_space<vmem>>, vector<1x32x16xf32>
    %44 = vector.shape_cast %43 : vector<1x32x16xf32> to vector<32x16xf32>
    %cst_38 = arith.constant dense<0.000000e+00> : vector<16x16xf32>
    %45 = tpu.matmul %42, %44, %cst_38 {dimension_numbers = #tpu.dot_dimension_numbers<[1], [0], [0], [1], [0, 0, 1, 1], [], []>} : vector<16x32xf32>, vector<32x16xf32>, vector<16x16xf32> -> vector<16x16xf32>
    %c0_39 = arith.constant 0 : index
    %c0_40 = arith.constant 0 : index
    %c0_41 = arith.constant 0 : index
    %46 = vector.load %arg5[%c0_39, %c0_40, %c0_41] : memref<4x16x16xf32, #tpu.memory_space<vmem>>, vector<1x16x16xf32>
    %47 = vector.shape_cast %46 : vector<1x16x16xf32> to vector<16x16xf32>
    %cst_42 = arith.constant dense<0.000000e+00> : vector<16x16xf32>
    %48 = tpu.matmul %47, %45, %cst_42 {dimension_numbers = #tpu.dot_dimension_numbers<[1], [0], [0], [1], [0, 0, 1, 1], [], []>} : vector<16x16xf32>, vector<16x16xf32>, vector<16x16xf32> -> vector<16x16xf32>
    %c1_43 = arith.constant 1 : index
    %c0_44 = arith.constant 0 : index
    %c0_45 = arith.constant 0 : index
    %49 = vector.load %arg7[%c1_43, %c0_44, %c0_45] : memref<4x32x16xf32, #tpu.memory_space<vmem>>, vector<1x32x16xf32>
    %50 = vector.shape_cast %49 : vector<1x32x16xf32> to vector<32x16xf32>
    %cst_46 = arith.constant dense<0.000000e+00> : vector<16x16xf32>
    %51 = tpu.matmul %42, %50, %cst_46 {dimension_numbers = #tpu.dot_dimension_numbers<[1], [0], [0], [1], [0, 0, 1, 1], [], []>} : vector<16x32xf32>, vector<32x16xf32>, vector<16x16xf32> -> vector<16x16xf32>
    %c1_47 = arith.constant 1 : index
    %c0_48 = arith.constant 0 : index
    %c0_49 = arith.constant 0 : index
    %52 = vector.load %arg5[%c1_47, %c0_48, %c0_49] : memref<4x16x16xf32, #tpu.memory_space<vmem>>, vector<1x16x16xf32>
    %53 = vector.shape_cast %52 : vector<1x16x16xf32> to vector<16x16xf32>
    %cst_50 = arith.constant dense<0.000000e+00> : vector<16x16xf32>
    %54 = tpu.matmul %53, %51, %cst_50 {dimension_numbers = #tpu.dot_dimension_numbers<[1], [0], [0], [1], [0, 0, 1, 1], [], []>} : vector<16x16xf32>, vector<16x16xf32>, vector<16x16xf32> -> vector<16x16xf32>
    %55 = arith.addf %48, %54 : vector<16x16xf32>
    %c2_51 = arith.constant 2 : index
    %c0_52 = arith.constant 0 : index
    %c0_53 = arith.constant 0 : index
    %56 = vector.load %arg7[%c2_51, %c0_52, %c0_53] : memref<4x32x16xf32, #tpu.memory_space<vmem>>, vector<1x32x16xf32>
    %57 = vector.shape_cast %56 : vector<1x32x16xf32> to vector<32x16xf32>
    %cst_54 = arith.constant dense<0.000000e+00> : vector<16x16xf32>
    %58 = tpu.matmul %42, %57, %cst_54 {dimension_numbers = #tpu.dot_dimension_numbers<[1], [0], [0], [1], [0, 0, 1, 1], [], []>} : vector<16x32xf32>, vector<32x16xf32>, vector<16x16xf32> -> vector<16x16xf32>
    %c2_55 = arith.constant 2 : index
    %c0_56 = arith.constant 0 : index
    %c0_57 = arith.constant 0 : index
    %59 = vector.load %arg5[%c2_55, %c0_56, %c0_57] : memref<4x16x16xf32, #tpu.memory_space<vmem>>, vector<1x16x16xf32>
    %60 = vector.shape_cast %59 : vector<1x16x16xf32> to vector<16x16xf32>
    %cst_58 = arith.constant dense<0.000000e+00> : vector<16x16xf32>
    %61 = tpu.matmul %60, %58, %cst_58 {dimension_numbers = #tpu.dot_dimension_numbers<[1], [0], [0], [1], [0, 0, 1, 1], [], []>} : vector<16x16xf32>, vector<16x16xf32>, vector<16x16xf32> -> vector<16x16xf32>
    %62 = arith.addf %55, %61 : vector<16x16xf32>
    %c3_59 = arith.constant 3 : index
    %c0_60 = arith.constant 0 : index
    %c0_61 = arith.constant 0 : index
    %63 = vector.load %arg7[%c3_59, %c0_60, %c0_61] : memref<4x32x16xf32, #tpu.memory_space<vmem>>, vector<1x32x16xf32>
    %64 = vector.shape_cast %63 : vector<1x32x16xf32> to vector<32x16xf32>
    %cst_62 = arith.constant dense<0.000000e+00> : vector<16x16xf32>
    %65 = tpu.matmul %42, %64, %cst_62 {dimension_numbers = #tpu.dot_dimension_numbers<[1], [0], [0], [1], [0, 0, 1, 1], [], []>} : vector<16x32xf32>, vector<32x16xf32>, vector<16x16xf32> -> vector<16x16xf32>
    %c3_63 = arith.constant 3 : index
    %c0_64 = arith.constant 0 : index
    %c0_65 = arith.constant 0 : index
    %66 = vector.load %arg5[%c3_63, %c0_64, %c0_65] : memref<4x16x16xf32, #tpu.memory_space<vmem>>, vector<1x16x16xf32>
    %67 = vector.shape_cast %66 : vector<1x16x16xf32> to vector<16x16xf32>
    %cst_66 = arith.constant dense<0.000000e+00> : vector<16x16xf32>
    %68 = tpu.matmul %67, %65, %cst_66 {dimension_numbers = #tpu.dot_dimension_numbers<[1], [0], [0], [1], [0, 0, 1, 1], [], []>} : vector<16x16xf32>, vector<16x16xf32>, vector<16x16xf32> -> vector<16x16xf32>
    %69 = arith.addf %62, %68 : vector<16x16xf32>
    %c0_67 = arith.constant 0 : index
    %c0_68 = arith.constant 0 : index
    %70 = vector.load %arg6[%c0_67, %c0_68] : memref<16x1xf32, #tpu.memory_space<vmem>>, vector<16x1xf32>
    %71 = vector.broadcast %70 : vector<16x1xf32> to vector<16x16xf32>
    %72 = arith.addf %69, %71 : vector<16x16xf32>
    %cst_69 = arith.constant 2.000000e+01 : f32
    %73 = vector.broadcast %cst_69 : f32 to vector<16x16xf32>
    %74 = arith.minimumf %72, %73 : vector<16x16xf32>
    %75 = math.exp %74 : vector<16x16xf32>
    %cst_70 = arith.constant 2.000000e+00 : f32
    %76 = vector.broadcast %cst_70 : f32 to vector<16x16xf32>
    %77 = arith.addf %75, %76 : vector<16x16xf32>
    %78 = arith.mulf %75, %77 : vector<16x16xf32>
    %79 = arith.mulf %72, %78 : vector<16x16xf32>
    %cst_71 = arith.constant 2.000000e+00 : f32
    %80 = vector.broadcast %cst_71 : f32 to vector<16x16xf32>
    %81 = arith.addf %78, %80 : vector<16x16xf32>
    %82 = tpu.reciprocal %81 {approx = true} : vector<16x16xf32> -> vector<16x16xf32>
    %83 = arith.mulf %79, %82 : vector<16x16xf32>
    %c0_72 = arith.constant 0 : index
    %c0_73 = arith.constant 0 : index
    %c0_74 = arith.constant 0 : index
    %84 = vector.load %arg10[%c0_72, %c0_73, %c0_74] : memref<3x16x16xf32, #tpu.memory_space<vmem>>, vector<1x16x16xf32>
    %85 = vector.shape_cast %84 : vector<1x16x16xf32> to vector<16x16xf32>
    %cst_75 = arith.constant dense<0.000000e+00> : vector<16x16xf32>
    %86 = tpu.matmul %83, %85, %cst_75 {dimension_numbers = #tpu.dot_dimension_numbers<[1], [0], [0], [1], [0, 0, 1, 1], [], []>} : vector<16x16xf32>, vector<16x16xf32>, vector<16x16xf32> -> vector<16x16xf32>
    %c0_76 = arith.constant 0 : index
    %c0_77 = arith.constant 0 : index
    %c0_78 = arith.constant 0 : index
    %87 = vector.load %arg8[%c0_76, %c0_77, %c0_78] : memref<3x32x16xf32, #tpu.memory_space<vmem>>, vector<1x32x16xf32>
    %88 = vector.shape_cast %87 : vector<1x32x16xf32> to vector<32x16xf32>
    %cst_79 = arith.constant dense<0.000000e+00> : vector<32x16xf32>
    %89 = tpu.matmul %88, %86, %cst_79 {dimension_numbers = #tpu.dot_dimension_numbers<[1], [0], [0], [1], [0, 0, 1, 1], [], []>} : vector<32x16xf32>, vector<16x16xf32>, vector<32x16xf32> -> vector<32x16xf32>
    %c1_80 = arith.constant 1 : index
    %c0_81 = arith.constant 0 : index
    %c0_82 = arith.constant 0 : index
    %90 = vector.load %arg10[%c1_80, %c0_81, %c0_82] : memref<3x16x16xf32, #tpu.memory_space<vmem>>, vector<1x16x16xf32>
    %91 = vector.shape_cast %90 : vector<1x16x16xf32> to vector<16x16xf32>
    %cst_83 = arith.constant dense<0.000000e+00> : vector<16x16xf32>
    %92 = tpu.matmul %83, %91, %cst_83 {dimension_numbers = #tpu.dot_dimension_numbers<[1], [0], [0], [1], [0, 0, 1, 1], [], []>} : vector<16x16xf32>, vector<16x16xf32>, vector<16x16xf32> -> vector<16x16xf32>
    %c1_84 = arith.constant 1 : index
    %c0_85 = arith.constant 0 : index
    %c0_86 = arith.constant 0 : index
    %93 = vector.load %arg8[%c1_84, %c0_85, %c0_86] : memref<3x32x16xf32, #tpu.memory_space<vmem>>, vector<1x32x16xf32>
    %94 = vector.shape_cast %93 : vector<1x32x16xf32> to vector<32x16xf32>
    %cst_87 = arith.constant dense<0.000000e+00> : vector<32x16xf32>
    %95 = tpu.matmul %94, %92, %cst_87 {dimension_numbers = #tpu.dot_dimension_numbers<[1], [0], [0], [1], [0, 0, 1, 1], [], []>} : vector<32x16xf32>, vector<16x16xf32>, vector<32x16xf32> -> vector<32x16xf32>
    %96 = arith.addf %89, %95 : vector<32x16xf32>
    %c2_88 = arith.constant 2 : index
    %c0_89 = arith.constant 0 : index
    %c0_90 = arith.constant 0 : index
    %97 = vector.load %arg10[%c2_88, %c0_89, %c0_90] : memref<3x16x16xf32, #tpu.memory_space<vmem>>, vector<1x16x16xf32>
    %98 = vector.shape_cast %97 : vector<1x16x16xf32> to vector<16x16xf32>
    %cst_91 = arith.constant dense<0.000000e+00> : vector<16x16xf32>
    %99 = tpu.matmul %83, %98, %cst_91 {dimension_numbers = #tpu.dot_dimension_numbers<[1], [0], [0], [1], [0, 0, 1, 1], [], []>} : vector<16x16xf32>, vector<16x16xf32>, vector<16x16xf32> -> vector<16x16xf32>
    %c2_92 = arith.constant 2 : index
    %c0_93 = arith.constant 0 : index
    %c0_94 = arith.constant 0 : index
    %100 = vector.load %arg8[%c2_92, %c0_93, %c0_94] : memref<3x32x16xf32, #tpu.memory_space<vmem>>, vector<1x32x16xf32>
    %101 = vector.shape_cast %100 : vector<1x32x16xf32> to vector<32x16xf32>
    %cst_95 = arith.constant dense<0.000000e+00> : vector<32x16xf32>
    %102 = tpu.matmul %101, %99, %cst_95 {dimension_numbers = #tpu.dot_dimension_numbers<[1], [0], [0], [1], [0, 0, 1, 1], [], []>} : vector<32x16xf32>, vector<16x16xf32>, vector<32x16xf32> -> vector<32x16xf32>
    %103 = arith.addf %96, %102 : vector<32x16xf32>
    %c0_96 = arith.constant 0 : index
    %c0_97 = arith.constant 0 : index
    %104 = vector.load %arg9[%c0_96, %c0_97] : memref<32x1xf32, #tpu.memory_space<vmem>>, vector<32x1xf32>
    %105 = vector.broadcast %104 : vector<32x1xf32> to vector<32x16xf32>
    %106 = arith.addf %103, %105 : vector<32x16xf32>
    %cst_98 = arith.constant 2.000000e+01 : f32
    %107 = vector.broadcast %cst_98 : f32 to vector<32x16xf32>
    %108 = arith.minimumf %106, %107 : vector<32x16xf32>
    %109 = math.exp %108 : vector<32x16xf32>
    %cst_99 = arith.constant 2.000000e+00 : f32
    %110 = vector.broadcast %cst_99 : f32 to vector<32x16xf32>
    %111 = arith.addf %109, %110 : vector<32x16xf32>
    %112 = arith.mulf %109, %111 : vector<32x16xf32>
    %113 = arith.mulf %106, %112 : vector<32x16xf32>
    %cst_100 = arith.constant 2.000000e+00 : f32
    %114 = vector.broadcast %cst_100 : f32 to vector<32x16xf32>
    %115 = arith.addf %112, %114 : vector<32x16xf32>
    %116 = tpu.reciprocal %115 {approx = true} : vector<32x16xf32> -> vector<32x16xf32>
    %117 = arith.mulf %113, %116 : vector<32x16xf32>
    %cst_101 = arith.constant 2.000000e+01 : f32
    %118 = vector.broadcast %cst_101 : f32 to vector<32x16xf32>
    %119 = arith.minimumf %117, %118 : vector<32x16xf32>
    %120 = math.exp %119 : vector<32x16xf32>
    %cst_102 = arith.constant 2.000000e+00 : f32
    %121 = vector.broadcast %cst_102 : f32 to vector<32x16xf32>
    %122 = arith.addf %120, %121 : vector<32x16xf32>
    %123 = arith.mulf %120, %122 : vector<32x16xf32>
    %124 = arith.mulf %117, %123 : vector<32x16xf32>
    %cst_103 = arith.constant 2.000000e+00 : f32
    %125 = vector.broadcast %cst_103 : f32 to vector<32x16xf32>
    %126 = arith.addf %123, %125 : vector<32x16xf32>
    %127 = tpu.reciprocal %126 {approx = true} : vector<32x16xf32> -> vector<32x16xf32>
    %128 = arith.mulf %124, %127 : vector<32x16xf32>
    %c0_104 = arith.constant 0 : index
    %c0_105 = arith.constant 0 : index
    %c0_106 = arith.constant 0 : index
    %129 = vector.load %arg10[%c0_104, %c0_105, %c0_106] : memref<3x16x16xf32, #tpu.memory_space<vmem>>, vector<1x16x16xf32>
    %130 = vector.shape_cast %129 : vector<1x16x16xf32> to vector<16x16xf32>
    %cst_107 = arith.constant dense<0.000000e+00> : vector<32x16xf32>
    %131 = tpu.matmul %128, %130, %cst_107 {dimension_numbers = #tpu.dot_dimension_numbers<[1], [0], [0], [1], [0, 0, 1, 1], [], []>} : vector<32x16xf32>, vector<16x16xf32>, vector<32x16xf32> -> vector<32x16xf32>
    %c0_108 = arith.constant 0 : index
    %c0_109 = arith.constant 0 : index
    %c0_110 = arith.constant 0 : index
    %132 = vector.load %arg11[%c0_108, %c0_109, %c0_110] : memref<9x32x32xf32, #tpu.memory_space<vmem>>, vector<1x32x32xf32>
    %133 = vector.shape_cast %132 : vector<1x32x32xf32> to vector<32x32xf32>
    %cst_111 = arith.constant dense<0.000000e+00> : vector<32x16xf32>
    %134 = tpu.matmul %133, %131, %cst_111 {dimension_numbers = #tpu.dot_dimension_numbers<[1], [0], [0], [1], [0, 0, 1, 1], [], []>} : vector<32x32xf32>, vector<32x16xf32>, vector<32x16xf32> -> vector<32x16xf32>
    %c1_112 = arith.constant 1 : index
    %c0_113 = arith.constant 0 : index
    %c0_114 = arith.constant 0 : index
    %135 = vector.load %arg10[%c1_112, %c0_113, %c0_114] : memref<3x16x16xf32, #tpu.memory_space<vmem>>, vector<1x16x16xf32>
    %136 = vector.shape_cast %135 : vector<1x16x16xf32> to vector<16x16xf32>
    %cst_115 = arith.constant dense<0.000000e+00> : vector<32x16xf32>
    %137 = tpu.matmul %128, %136, %cst_115 {dimension_numbers = #tpu.dot_dimension_numbers<[1], [0], [0], [1], [0, 0, 1, 1], [], []>} : vector<32x16xf32>, vector<16x16xf32>, vector<32x16xf32> -> vector<32x16xf32>
    %c1_116 = arith.constant 1 : index
    %c0_117 = arith.constant 0 : index
    %c0_118 = arith.constant 0 : index
    %138 = vector.load %arg11[%c1_116, %c0_117, %c0_118] : memref<9x32x32xf32, #tpu.memory_space<vmem>>, vector<1x32x32xf32>
    %139 = vector.shape_cast %138 : vector<1x32x32xf32> to vector<32x32xf32>
    %cst_119 = arith.constant dense<0.000000e+00> : vector<32x16xf32>
    %140 = tpu.matmul %139, %137, %cst_119 {dimension_numbers = #tpu.dot_dimension_numbers<[1], [0], [0], [1], [0, 0, 1, 1], [], []>} : vector<32x32xf32>, vector<32x16xf32>, vector<32x16xf32> -> vector<32x16xf32>
    %141 = arith.addf %134, %140 : vector<32x16xf32>
    %c2_120 = arith.constant 2 : index
    %c0_121 = arith.constant 0 : index
    %c0_122 = arith.constant 0 : index
    %142 = vector.load %arg10[%c2_120, %c0_121, %c0_122] : memref<3x16x16xf32, #tpu.memory_space<vmem>>, vector<1x16x16xf32>
    %143 = vector.shape_cast %142 : vector<1x16x16xf32> to vector<16x16xf32>
    %cst_123 = arith.constant dense<0.000000e+00> : vector<32x16xf32>
    %144 = tpu.matmul %128, %143, %cst_123 {dimension_numbers = #tpu.dot_dimension_numbers<[1], [0], [0], [1], [0, 0, 1, 1], [], []>} : vector<32x16xf32>, vector<16x16xf32>, vector<32x16xf32> -> vector<32x16xf32>
    %c2_124 = arith.constant 2 : index
    %c0_125 = arith.constant 0 : index
    %c0_126 = arith.constant 0 : index
    %145 = vector.load %arg11[%c2_124, %c0_125, %c0_126] : memref<9x32x32xf32, #tpu.memory_space<vmem>>, vector<1x32x32xf32>
    %146 = vector.shape_cast %145 : vector<1x32x32xf32> to vector<32x32xf32>
    %cst_127 = arith.constant dense<0.000000e+00> : vector<32x16xf32>
    %147 = tpu.matmul %146, %144, %cst_127 {dimension_numbers = #tpu.dot_dimension_numbers<[1], [0], [0], [1], [0, 0, 1, 1], [], []>} : vector<32x32xf32>, vector<32x16xf32>, vector<32x16xf32> -> vector<32x16xf32>
    %148 = arith.addf %141, %147 : vector<32x16xf32>
    %c0_128 = arith.constant 0 : index
    %c0_129 = arith.constant 0 : index
    %c0_130 = arith.constant 0 : index
    %149 = vector.load %arg12[%c0_128, %c0_129, %c0_130] : memref<3x32x1xf32, #tpu.memory_space<vmem>>, vector<1x32x1xf32>
    %150 = vector.shape_cast %149 : vector<1x32x1xf32> to vector<32x1xf32>
    %151 = vector.broadcast %150 : vector<32x1xf32> to vector<32x16xf32>
    %152 = arith.addf %148, %151 : vector<32x16xf32>
    %cst_131 = arith.constant 2.000000e+01 : f32
    %153 = vector.broadcast %cst_131 : f32 to vector<32x16xf32>
    %154 = arith.minimumf %152, %153 : vector<32x16xf32>
    %155 = math.exp %154 : vector<32x16xf32>
    %cst_132 = arith.constant 2.000000e+00 : f32
    %156 = vector.broadcast %cst_132 : f32 to vector<32x16xf32>
    %157 = arith.addf %155, %156 : vector<32x16xf32>
    %158 = arith.mulf %155, %157 : vector<32x16xf32>
    %159 = arith.mulf %152, %158 : vector<32x16xf32>
    %cst_133 = arith.constant 2.000000e+00 : f32
    %160 = vector.broadcast %cst_133 : f32 to vector<32x16xf32>
    %161 = arith.addf %158, %160 : vector<32x16xf32>
    %162 = tpu.reciprocal %161 {approx = true} : vector<32x16xf32> -> vector<32x16xf32>
    %163 = arith.mulf %159, %162 : vector<32x16xf32>
    %c0_134 = arith.constant 0 : index
    %c0_135 = arith.constant 0 : index
    %c0_136 = arith.constant 0 : index
    %164 = vector.load %arg13[%c0_134, %c0_135, %c0_136] : memref<3x32x32xf32, #tpu.memory_space<vmem>>, vector<1x32x32xf32>
    %165 = vector.shape_cast %164 : vector<1x32x32xf32> to vector<32x32xf32>
    %cst_137 = arith.constant dense<0.000000e+00> : vector<32x16xf32>
    %166 = tpu.matmul %165, %163, %cst_137 {dimension_numbers = #tpu.dot_dimension_numbers<[1], [0], [0], [1], [0, 0, 1, 1], [], []>} : vector<32x32xf32>, vector<32x16xf32>, vector<32x16xf32> -> vector<32x16xf32>
    %167 = arith.addf %117, %166 : vector<32x16xf32>
    %c0_138 = arith.constant 0 : index
    %c0_139 = arith.constant 0 : index
    %c0_140 = arith.constant 0 : index
    %168 = vector.load %arg14[%c0_138, %c0_139, %c0_140] : memref<3x32x1xf32, #tpu.memory_space<vmem>>, vector<1x32x1xf32>
    %169 = vector.shape_cast %168 : vector<1x32x1xf32> to vector<32x1xf32>
    %170 = vector.broadcast %169 : vector<32x1xf32> to vector<32x16xf32>
    %171 = arith.addf %167, %170 : vector<32x16xf32>
    %cst_141 = arith.constant 2.000000e+01 : f32
    %172 = vector.broadcast %cst_141 : f32 to vector<32x16xf32>
    %173 = arith.minimumf %171, %172 : vector<32x16xf32>
    %174 = math.exp %173 : vector<32x16xf32>
    %cst_142 = arith.constant 2.000000e+00 : f32
    %175 = vector.broadcast %cst_142 : f32 to vector<32x16xf32>
    %176 = arith.addf %174, %175 : vector<32x16xf32>
    %177 = arith.mulf %174, %176 : vector<32x16xf32>
    %178 = arith.mulf %171, %177 : vector<32x16xf32>
    %cst_143 = arith.constant 2.000000e+00 : f32
    %179 = vector.broadcast %cst_143 : f32 to vector<32x16xf32>
    %180 = arith.addf %177, %179 : vector<32x16xf32>
    %181 = tpu.reciprocal %180 {approx = true} : vector<32x16xf32> -> vector<32x16xf32>
    %182 = arith.mulf %178, %181 : vector<32x16xf32>
    %c0_144 = arith.constant 0 : index
    %c0_145 = arith.constant 0 : index
    %c0_146 = arith.constant 0 : index
    %183 = vector.load %arg10[%c0_144, %c0_145, %c0_146] : memref<3x16x16xf32, #tpu.memory_space<vmem>>, vector<1x16x16xf32>
    %184 = vector.shape_cast %183 : vector<1x16x16xf32> to vector<16x16xf32>
    %cst_147 = arith.constant dense<0.000000e+00> : vector<32x16xf32>
    %185 = tpu.matmul %182, %184, %cst_147 {dimension_numbers = #tpu.dot_dimension_numbers<[1], [0], [0], [1], [0, 0, 1, 1], [], []>} : vector<32x16xf32>, vector<16x16xf32>, vector<32x16xf32> -> vector<32x16xf32>
    %c3_148 = arith.constant 3 : index
    %c0_149 = arith.constant 0 : index
    %c0_150 = arith.constant 0 : index
    %186 = vector.load %arg11[%c3_148, %c0_149, %c0_150] : memref<9x32x32xf32, #tpu.memory_space<vmem>>, vector<1x32x32xf32>
    %187 = vector.shape_cast %186 : vector<1x32x32xf32> to vector<32x32xf32>
    %cst_151 = arith.constant dense<0.000000e+00> : vector<32x16xf32>
    %188 = tpu.matmul %187, %185, %cst_151 {dimension_numbers = #tpu.dot_dimension_numbers<[1], [0], [0], [1], [0, 0, 1, 1], [], []>} : vector<32x32xf32>, vector<32x16xf32>, vector<32x16xf32> -> vector<32x16xf32>
    %c1_152 = arith.constant 1 : index
    %c0_153 = arith.constant 0 : index
    %c0_154 = arith.constant 0 : index
    %189 = vector.load %arg10[%c1_152, %c0_153, %c0_154] : memref<3x16x16xf32, #tpu.memory_space<vmem>>, vector<1x16x16xf32>
    %190 = vector.shape_cast %189 : vector<1x16x16xf32> to vector<16x16xf32>
    %cst_155 = arith.constant dense<0.000000e+00> : vector<32x16xf32>
    %191 = tpu.matmul %182, %190, %cst_155 {dimension_numbers = #tpu.dot_dimension_numbers<[1], [0], [0], [1], [0, 0, 1, 1], [], []>} : vector<32x16xf32>, vector<16x16xf32>, vector<32x16xf32> -> vector<32x16xf32>
    %c4 = arith.constant 4 : index
    %c0_156 = arith.constant 0 : index
    %c0_157 = arith.constant 0 : index
    %192 = vector.load %arg11[%c4, %c0_156, %c0_157] : memref<9x32x32xf32, #tpu.memory_space<vmem>>, vector<1x32x32xf32>
    %193 = vector.shape_cast %192 : vector<1x32x32xf32> to vector<32x32xf32>
    %cst_158 = arith.constant dense<0.000000e+00> : vector<32x16xf32>
    %194 = tpu.matmul %193, %191, %cst_158 {dimension_numbers = #tpu.dot_dimension_numbers<[1], [0], [0], [1], [0, 0, 1, 1], [], []>} : vector<32x32xf32>, vector<32x16xf32>, vector<32x16xf32> -> vector<32x16xf32>
    %195 = arith.addf %188, %194 : vector<32x16xf32>
    %c2_159 = arith.constant 2 : index
    %c0_160 = arith.constant 0 : index
    %c0_161 = arith.constant 0 : index
    %196 = vector.load %arg10[%c2_159, %c0_160, %c0_161] : memref<3x16x16xf32, #tpu.memory_space<vmem>>, vector<1x16x16xf32>
    %197 = vector.shape_cast %196 : vector<1x16x16xf32> to vector<16x16xf32>
    %cst_162 = arith.constant dense<0.000000e+00> : vector<32x16xf32>
    %198 = tpu.matmul %182, %197, %cst_162 {dimension_numbers = #tpu.dot_dimension_numbers<[1], [0], [0], [1], [0, 0, 1, 1], [], []>} : vector<32x16xf32>, vector<16x16xf32>, vector<32x16xf32> -> vector<32x16xf32>
    %c5 = arith.constant 5 : index
    %c0_163 = arith.constant 0 : index
    %c0_164 = arith.constant 0 : index
    %199 = vector.load %arg11[%c5, %c0_163, %c0_164] : memref<9x32x32xf32, #tpu.memory_space<vmem>>, vector<1x32x32xf32>
    %200 = vector.shape_cast %199 : vector<1x32x32xf32> to vector<32x32xf32>
    %cst_165 = arith.constant dense<0.000000e+00> : vector<32x16xf32>
    %201 = tpu.matmul %200, %198, %cst_165 {dimension_numbers = #tpu.dot_dimension_numbers<[1], [0], [0], [1], [0, 0, 1, 1], [], []>} : vector<32x32xf32>, vector<32x16xf32>, vector<32x16xf32> -> vector<32x16xf32>
    %202 = arith.addf %195, %201 : vector<32x16xf32>
    %c1_166 = arith.constant 1 : index
    %c0_167 = arith.constant 0 : index
    %c0_168 = arith.constant 0 : index
    %203 = vector.load %arg12[%c1_166, %c0_167, %c0_168] : memref<3x32x1xf32, #tpu.memory_space<vmem>>, vector<1x32x1xf32>
    %204 = vector.shape_cast %203 : vector<1x32x1xf32> to vector<32x1xf32>
    %205 = vector.broadcast %204 : vector<32x1xf32> to vector<32x16xf32>
    %206 = arith.addf %202, %205 : vector<32x16xf32>
    %cst_169 = arith.constant 2.000000e+01 : f32
    %207 = vector.broadcast %cst_169 : f32 to vector<32x16xf32>
    %208 = arith.minimumf %206, %207 : vector<32x16xf32>
    %209 = math.exp %208 : vector<32x16xf32>
    %cst_170 = arith.constant 2.000000e+00 : f32
    %210 = vector.broadcast %cst_170 : f32 to vector<32x16xf32>
    %211 = arith.addf %209, %210 : vector<32x16xf32>
    %212 = arith.mulf %209, %211 : vector<32x16xf32>
    %213 = arith.mulf %206, %212 : vector<32x16xf32>
    %cst_171 = arith.constant 2.000000e+00 : f32
    %214 = vector.broadcast %cst_171 : f32 to vector<32x16xf32>
    %215 = arith.addf %212, %214 : vector<32x16xf32>
    %216 = tpu.reciprocal %215 {approx = true} : vector<32x16xf32> -> vector<32x16xf32>
    %217 = arith.mulf %213, %216 : vector<32x16xf32>
    %c1_172 = arith.constant 1 : index
    %c0_173 = arith.constant 0 : index
    %c0_174 = arith.constant 0 : index
    %218 = vector.load %arg13[%c1_172, %c0_173, %c0_174] : memref<3x32x32xf32, #tpu.memory_space<vmem>>, vector<1x32x32xf32>
    %219 = vector.shape_cast %218 : vector<1x32x32xf32> to vector<32x32xf32>
    %cst_175 = arith.constant dense<0.000000e+00> : vector<32x16xf32>
    %220 = tpu.matmul %219, %217, %cst_175 {dimension_numbers = #tpu.dot_dimension_numbers<[1], [0], [0], [1], [0, 0, 1, 1], [], []>} : vector<32x32xf32>, vector<32x16xf32>, vector<32x16xf32> -> vector<32x16xf32>
    %221 = arith.addf %171, %220 : vector<32x16xf32>
    %c1_176 = arith.constant 1 : index
    %c0_177 = arith.constant 0 : index
    %c0_178 = arith.constant 0 : index
    %222 = vector.load %arg14[%c1_176, %c0_177, %c0_178] : memref<3x32x1xf32, #tpu.memory_space<vmem>>, vector<1x32x1xf32>
    %223 = vector.shape_cast %222 : vector<1x32x1xf32> to vector<32x1xf32>
    %224 = vector.broadcast %223 : vector<32x1xf32> to vector<32x16xf32>
    %225 = arith.addf %221, %224 : vector<32x16xf32>
    %cst_179 = arith.constant 2.000000e+01 : f32
    %226 = vector.broadcast %cst_179 : f32 to vector<32x16xf32>
    %227 = arith.minimumf %225, %226 : vector<32x16xf32>
    %228 = math.exp %227 : vector<32x16xf32>
    %cst_180 = arith.constant 2.000000e+00 : f32
    %229 = vector.broadcast %cst_180 : f32 to vector<32x16xf32>
    %230 = arith.addf %228, %229 : vector<32x16xf32>
    %231 = arith.mulf %228, %230 : vector<32x16xf32>
    %232 = arith.mulf %225, %231 : vector<32x16xf32>
    %cst_181 = arith.constant 2.000000e+00 : f32
    %233 = vector.broadcast %cst_181 : f32 to vector<32x16xf32>
    %234 = arith.addf %231, %233 : vector<32x16xf32>
    %235 = tpu.reciprocal %234 {approx = true} : vector<32x16xf32> -> vector<32x16xf32>
    %236 = arith.mulf %232, %235 : vector<32x16xf32>
    %c0_182 = arith.constant 0 : index
    %c0_183 = arith.constant 0 : index
    %c0_184 = arith.constant 0 : index
    %237 = vector.load %arg10[%c0_182, %c0_183, %c0_184] : memref<3x16x16xf32, #tpu.memory_space<vmem>>, vector<1x16x16xf32>
    %238 = vector.shape_cast %237 : vector<1x16x16xf32> to vector<16x16xf32>
    %cst_185 = arith.constant dense<0.000000e+00> : vector<32x16xf32>
    %239 = tpu.matmul %236, %238, %cst_185 {dimension_numbers = #tpu.dot_dimension_numbers<[1], [0], [0], [1], [0, 0, 1, 1], [], []>} : vector<32x16xf32>, vector<16x16xf32>, vector<32x16xf32> -> vector<32x16xf32>
    %c6 = arith.constant 6 : index
    %c0_186 = arith.constant 0 : index
    %c0_187 = arith.constant 0 : index
    %240 = vector.load %arg11[%c6, %c0_186, %c0_187] : memref<9x32x32xf32, #tpu.memory_space<vmem>>, vector<1x32x32xf32>
    %241 = vector.shape_cast %240 : vector<1x32x32xf32> to vector<32x32xf32>
    %cst_188 = arith.constant dense<0.000000e+00> : vector<32x16xf32>
    %242 = tpu.matmul %241, %239, %cst_188 {dimension_numbers = #tpu.dot_dimension_numbers<[1], [0], [0], [1], [0, 0, 1, 1], [], []>} : vector<32x32xf32>, vector<32x16xf32>, vector<32x16xf32> -> vector<32x16xf32>
    %c1_189 = arith.constant 1 : index
    %c0_190 = arith.constant 0 : index
    %c0_191 = arith.constant 0 : index
    %243 = vector.load %arg10[%c1_189, %c0_190, %c0_191] : memref<3x16x16xf32, #tpu.memory_space<vmem>>, vector<1x16x16xf32>
    %244 = vector.shape_cast %243 : vector<1x16x16xf32> to vector<16x16xf32>
    %cst_192 = arith.constant dense<0.000000e+00> : vector<32x16xf32>
    %245 = tpu.matmul %236, %244, %cst_192 {dimension_numbers = #tpu.dot_dimension_numbers<[1], [0], [0], [1], [0, 0, 1, 1], [], []>} : vector<32x16xf32>, vector<16x16xf32>, vector<32x16xf32> -> vector<32x16xf32>
    %c7 = arith.constant 7 : index
    %c0_193 = arith.constant 0 : index
    %c0_194 = arith.constant 0 : index
    %246 = vector.load %arg11[%c7, %c0_193, %c0_194] : memref<9x32x32xf32, #tpu.memory_space<vmem>>, vector<1x32x32xf32>
    %247 = vector.shape_cast %246 : vector<1x32x32xf32> to vector<32x32xf32>
    %cst_195 = arith.constant dense<0.000000e+00> : vector<32x16xf32>
    %248 = tpu.matmul %247, %245, %cst_195 {dimension_numbers = #tpu.dot_dimension_numbers<[1], [0], [0], [1], [0, 0, 1, 1], [], []>} : vector<32x32xf32>, vector<32x16xf32>, vector<32x16xf32> -> vector<32x16xf32>
    %249 = arith.addf %242, %248 : vector<32x16xf32>
    %c2_196 = arith.constant 2 : index
    %c0_197 = arith.constant 0 : index
    %c0_198 = arith.constant 0 : index
    %250 = vector.load %arg10[%c2_196, %c0_197, %c0_198] : memref<3x16x16xf32, #tpu.memory_space<vmem>>, vector<1x16x16xf32>
    %251 = vector.shape_cast %250 : vector<1x16x16xf32> to vector<16x16xf32>
    %cst_199 = arith.constant dense<0.000000e+00> : vector<32x16xf32>
    %252 = tpu.matmul %236, %251, %cst_199 {dimension_numbers = #tpu.dot_dimension_numbers<[1], [0], [0], [1], [0, 0, 1, 1], [], []>} : vector<32x16xf32>, vector<16x16xf32>, vector<32x16xf32> -> vector<32x16xf32>
    %c8 = arith.constant 8 : index
    %c0_200 = arith.constant 0 : index
    %c0_201 = arith.constant 0 : index
    %253 = vector.load %arg11[%c8, %c0_200, %c0_201] : memref<9x32x32xf32, #tpu.memory_space<vmem>>, vector<1x32x32xf32>
    %254 = vector.shape_cast %253 : vector<1x32x32xf32> to vector<32x32xf32>
    %cst_202 = arith.constant dense<0.000000e+00> : vector<32x16xf32>
    %255 = tpu.matmul %254, %252, %cst_202 {dimension_numbers = #tpu.dot_dimension_numbers<[1], [0], [0], [1], [0, 0, 1, 1], [], []>} : vector<32x32xf32>, vector<32x16xf32>, vector<32x16xf32> -> vector<32x16xf32>
    %256 = arith.addf %249, %255 : vector<32x16xf32>
    %c2_203 = arith.constant 2 : index
    %c0_204 = arith.constant 0 : index
    %c0_205 = arith.constant 0 : index
    %257 = vector.load %arg12[%c2_203, %c0_204, %c0_205] : memref<3x32x1xf32, #tpu.memory_space<vmem>>, vector<1x32x1xf32>
    %258 = vector.shape_cast %257 : vector<1x32x1xf32> to vector<32x1xf32>
    %259 = vector.broadcast %258 : vector<32x1xf32> to vector<32x16xf32>
    %260 = arith.addf %256, %259 : vector<32x16xf32>
    %cst_206 = arith.constant 2.000000e+01 : f32
    %261 = vector.broadcast %cst_206 : f32 to vector<32x16xf32>
    %262 = arith.minimumf %260, %261 : vector<32x16xf32>
    %263 = math.exp %262 : vector<32x16xf32>
    %cst_207 = arith.constant 2.000000e+00 : f32
    %264 = vector.broadcast %cst_207 : f32 to vector<32x16xf32>
    %265 = arith.addf %263, %264 : vector<32x16xf32>
    %266 = arith.mulf %263, %265 : vector<32x16xf32>
    %267 = arith.mulf %260, %266 : vector<32x16xf32>
    %cst_208 = arith.constant 2.000000e+00 : f32
    %268 = vector.broadcast %cst_208 : f32 to vector<32x16xf32>
    %269 = arith.addf %266, %268 : vector<32x16xf32>
    %270 = tpu.reciprocal %269 {approx = true} : vector<32x16xf32> -> vector<32x16xf32>
    %271 = arith.mulf %267, %270 : vector<32x16xf32>
    %c2_209 = arith.constant 2 : index
    %c0_210 = arith.constant 0 : index
    %c0_211 = arith.constant 0 : index
    %272 = vector.load %arg13[%c2_209, %c0_210, %c0_211] : memref<3x32x32xf32, #tpu.memory_space<vmem>>, vector<1x32x32xf32>
    %273 = vector.shape_cast %272 : vector<1x32x32xf32> to vector<32x32xf32>
    %cst_212 = arith.constant dense<0.000000e+00> : vector<32x16xf32>
    %274 = tpu.matmul %273, %271, %cst_212 {dimension_numbers = #tpu.dot_dimension_numbers<[1], [0], [0], [1], [0, 0, 1, 1], [], []>} : vector<32x32xf32>, vector<32x16xf32>, vector<32x16xf32> -> vector<32x16xf32>
    %275 = arith.addf %225, %274 : vector<32x16xf32>
    %c2_213 = arith.constant 2 : index
    %c0_214 = arith.constant 0 : index
    %c0_215 = arith.constant 0 : index
    %276 = vector.load %arg14[%c2_213, %c0_214, %c0_215] : memref<3x32x1xf32, #tpu.memory_space<vmem>>, vector<1x32x1xf32>
    %277 = vector.shape_cast %276 : vector<1x32x1xf32> to vector<32x1xf32>
    %278 = vector.broadcast %277 : vector<32x1xf32> to vector<32x16xf32>
    %279 = arith.addf %275, %278 : vector<32x16xf32>
    %cst_216 = arith.constant 0.000000e+00 : f32
    %280 = vector.broadcast %cst_216 : f32 to vector<32x16xf32>
    %281 = arith.maximumf %279, %280 : vector<32x16xf32>
    %c0_217 = arith.constant 0 : index
    %c0_218 = arith.constant 0 : index
    %c0_219 = arith.constant 0 : index
    %282 = vector.load %arg15[%c0_217, %c0_218, %c0_219] : memref<1x32x16xf32, #tpu.memory_space<vmem>>, vector<1x32x16xf32>
    %283 = vector.shape_cast %282 : vector<1x32x16xf32> to vector<32x16xf32>
    %284 = vector.shape_cast %281 : vector<32x16xf32> to vector<1x32x16xf32>
    tpu.vector_store %arg15[%c0_217, %c0_218, %c0_219], %284 {strides = array<i32>} : memref<1x32x16xf32, #tpu.memory_space<vmem>>, vector<1x32x16xf32>,
    return
  }
  func.func @transform_0(%arg0: i32) -> (i32, i32, i32) {
    %c0_i32 = arith.constant 0 : i32
    %c0_i32_0 = arith.constant 0 : i32
    %c0_i32_1 = arith.constant 0 : i32
    return %arg0, %c0_i32, %c0_i32_0 : i32, i32, i32
  }
  func.func @transform_1(%arg0: i32) -> (i32, i32, i32) {
    %c0_i32 = arith.constant 0 : i32
    %c0_i32_0 = arith.constant 0 : i32
    %c0_i32_1 = arith.constant 0 : i32
    %c0_i32_2 = arith.constant 0 : i32
    return %c0_i32, %c0_i32_0, %c0_i32_1 : i32, i32, i32
  }
  func.func @transform_2(%arg0: i32) -> (i32, i32) {
    %c0_i32 = arith.constant 0 : i32
    %c0_i32_0 = arith.constant 0 : i32
    %c0_i32_1 = arith.constant 0 : i32
    return %c0_i32, %c0_i32_0 : i32, i32
  }
  func.func @transform_3(%arg0: i32) -> (i32, i32, i32) {
    %c0_i32 = arith.constant 0 : i32
    %c0_i32_0 = arith.constant 0 : i32
    %c0_i32_1 = arith.constant 0 : i32
    %c0_i32_2 = arith.constant 0 : i32
    return %c0_i32, %c0_i32_0, %c0_i32_1 : i32, i32, i32
  }
  func.func @transform_4(%arg0: i32) -> (i32, i32, i32) {
    %c0_i32 = arith.constant 0 : i32
    %c0_i32_0 = arith.constant 0 : i32
    %c0_i32_1 = arith.constant 0 : i32
    %c0_i32_2 = arith.constant 0 : i32
    return %c0_i32, %c0_i32_0, %c0_i32_1 : i32, i32, i32
  }
  func.func @transform_5(%arg0: i32) -> (i32, i32) {
    %c0_i32 = arith.constant 0 : i32
    %c0_i32_0 = arith.constant 0 : i32
    %c0_i32_1 = arith.constant 0 : i32
    return %c0_i32, %c0_i32_0 : i32, i32
  }
  func.func @transform_6(%arg0: i32) -> (i32, i32, i32) {
    %c0_i32 = arith.constant 0 : i32
    %c0_i32_0 = arith.constant 0 : i32
    %c0_i32_1 = arith.constant 0 : i32
    %c0_i32_2 = arith.constant 0 : i32
    return %c0_i32, %c0_i32_0, %c0_i32_1 : i32, i32, i32
  }
  func.func @transform_7(%arg0: i32) -> (i32, i32, i32) {
    %c0_i32 = arith.constant 0 : i32
    %c0_i32_0 = arith.constant 0 : i32
    %c0_i32_1 = arith.constant 0 : i32
    %c0_i32_2 = arith.constant 0 : i32
    return %c0_i32, %c0_i32_0, %c0_i32_1 : i32, i32, i32
  }
  func.func @transform_8(%arg0: i32) -> (i32, i32) {
    %c0_i32 = arith.constant 0 : i32
    %c0_i32_0 = arith.constant 0 : i32
    %c0_i32_1 = arith.constant 0 : i32
    return %c0_i32, %c0_i32_0 : i32, i32
  }
  func.func @transform_9(%arg0: i32) -> (i32, i32, i32) {
    %c0_i32 = arith.constant 0 : i32
    %c0_i32_0 = arith.constant 0 : i32
    %c0_i32_1 = arith.constant 0 : i32
    %c0_i32_2 = arith.constant 0 : i32
    return %c0_i32, %c0_i32_0, %c0_i32_1 : i32, i32, i32
  }
  func.func @transform_10(%arg0: i32) -> (i32, i32, i32) {
    %c0_i32 = arith.constant 0 : i32
    %c0_i32_0 = arith.constant 0 : i32
    %c0_i32_1 = arith.constant 0 : i32
    %c0_i32_2 = arith.constant 0 : i32
    return %c0_i32, %c0_i32_0, %c0_i32_1 : i32, i32, i32
  }
  func.func @transform_11(%arg0: i32) -> (i32, i32, i32) {
    %c0_i32 = arith.constant 0 : i32
    %c0_i32_0 = arith.constant 0 : i32
    %c0_i32_1 = arith.constant 0 : i32
    %c0_i32_2 = arith.constant 0 : i32
    return %c0_i32, %c0_i32_0, %c0_i32_1 : i32, i32, i32
  }
  func.func @transform_12(%arg0: i32) -> (i32, i32, i32) {
    %c0_i32 = arith.constant 0 : i32
    %c0_i32_0 = arith.constant 0 : i32
    %c0_i32_1 = arith.constant 0 : i32
    %c0_i32_2 = arith.constant 0 : i32
    return %c0_i32, %c0_i32_0, %c0_i32_1 : i32, i32, i32
  }
  func.func @transform_13(%arg0: i32) -> (i32, i32, i32) {
    %c0_i32 = arith.constant 0 : i32
    %c0_i32_0 = arith.constant 0 : i32
    %c0_i32_1 = arith.constant 0 : i32
    %c0_i32_2 = arith.constant 0 : i32
    return %c0_i32, %c0_i32_0, %c0_i32_1 : i32, i32, i32
  }
  func.func @transform_14(%arg0: i32) -> (i32, i32, i32) {
    %c0_i32 = arith.constant 0 : i32
    %c0_i32_0 = arith.constant 0 : i32
    %c0_i32_1 = arith.constant 0 : i32
    return %arg0, %c0_i32, %c0_i32_0 : i32, i32, i32
  }
}

</mosaic_0001>

<bundles_post_ra>
// kernel: encoder_forward.1
= control target key start
LH: loop header
LB: loop body
LE: loop exit
PB: predicated region body
PF: predicated region fallthrough
CT: control target
= control target key end

     0   :  { %s6509_s29 = smov 0   ;;  %s7288_s0 = inlined_call_operand.vmem [shape: f32[2,4,64], index: 0, kind: input, shape index: {}]   ;;  %s7289_s1 = inlined_call_operand.vmem [shape: f32[4,16,4], index: 1, kind: input, shape index: {}]   ;;  %s7290_s2 = inlined_call_operand.vmem [shape: f32[16,1], index: 2, kind: input, shape index: {}]   ;;  %s7291_s3 = inlined_call_operand.vmem [shape: f32[4,64,32], index: 3, kind: input, shape index: {}]   ;;  %s7292_s4 = inlined_call_operand.vmem [shape: f32[4,16,16], index: 4, kind: input, shape index: {}]   ;;  %s7293_s5 = inlined_call_operand.vmem [shape: f32[16,1], index: 5, kind: input, shape index: {}]   ;;  %s7294_s6 = inlined_call_operand.vmem [shape: f32[4,32,16], index: 6, kind: input, shape index: {}]   ;;  %s7295_s7 = inlined_call_operand.vmem [shape: f32[3,32,16], index: 7, kind: input, shape index: {}]   ;;  %s7296_s8 = inlined_call_operand.vmem [shape: f32[32,1], index: 8, kind: input, shape index: {}]   ;;  %s7297_s9 = inlined_call_operand.vmem [shape: f32[3,16,16], index: 9, kind: input, shape index: {}]   ;;  %s7298_s10 = inlined_call_operand.vmem [shape: f32[9,32,32], index: 10, kind: input, shape index: {}]   ;;  %s7299_s11 = inlined_call_operand.vmem [shape: f32[3,32,1], index: 11, kind: input, shape index: {}]   ;;  %s7300_s12 = inlined_call_operand.vmem [shape: f32[3,32,32], index: 12, kind: input, shape index: {}]   ;;  %s7301_s13 = inlined_call_operand.vmem [shape: f32[3,32,1], index: 13, kind: input, shape index: {}]   ;;  %s7302_s14 = inlined_call_operand.vmem [shape: f32[2,32,16], index: 14, kind: output, shape index: {}]  }
   0x1 LB: > { %s4978_s30 = sadd.s32 4294967295, %s6428_s29   ;;  %p4982_p0 = scmp.ge.s32.totalorder %s6428_s29, 1  ;;  %s6428_s29 = sphi %s6509_s29, %s24_s29  }
   0x2   : > { %p411_p1 = scmp.lt.s32.totalorder %s6428_s29, 3 }
   0x4   : > { %p412_p2 = pnand %p4982_p0, %p411_p1 }
   0x5   : > { %v4987_v0 = vld [vmem:[%s7291_s3 + $0x40] sm:$0xff] (!%p412_p2)  ;;  %v4988_v1 = vld [vmem:[%s7291_s3 + $0x48] sm:$0xff] (!%p412_p2)  ;;  %v4989_v2 = vld [vmem:[%s7291_s3 + $0x50] sm:$0xff] (!%p412_p2)  ;;  %v6430_v3 = vmov (!%p412_p2), 0.0|0.0   ;;  %p6539_p3 = scmp.lt.s32.totalorder (!%p412_p2), %s4978_s30, 1  ;;  %vm6431_vm0 = vmmov (!%p412_p2), 0  }
   0x6   : > { %415 = sbr.rel (%p412_p2) target bundleno = 3983 (0xf8f), region = 76  ;;  %5996 = vmatprep.subr.bf16.mxu1 (!%p412_p2), %v6430_v3  ;;  %v5997_v4 = vpack.c.bf16 (!%p412_p2), %v4988_v1, %v4987_v0  ;;  %v4990_v5 = vld [vmem:[%s7291_s3 + $0x58] sm:$0xff] (!%p412_p2)  ;;  %5984 = vmatprep.subr.bf16.mxu0 (!%p412_p2), %v6430_v3  ;;  %v466_v6 = vld [vmem:[%s7291_s3] sm:$0xff] (!%p412_p2)  ;;  %v467_v7 = vld [vmem:[%s7291_s3 + $0x8] sm:$0xff] (!%p412_p2)  ;;  %v6432_v10 = vmov (!%p412_p2), 0.0   ;;  %vm474_vm1 = vcmask (!%p412_p2), 523264  }
   0x7   : > { %v5985_v8 = vpack.c.bf16 (!%p412_p2), %v467_v7, %v466_v6  ;;  %v468_v9 = vld [vmem:[%s7291_s3 + $0x10] sm:$0xff] (!%p412_p2)  ;;  %5542 = vmatprep.mubr.msk.f32.mxu1 (!%p412_p2), %vm6431_vm0, %v6432_v10  ;;  %5523 = vmatprep.mubr.msk.f32.mxu0 (!%p412_p2), %vm6431_vm0, %v6432_v10  ;;  %v6000_v11 = vpack.c.bf16 (!%p412_p2), %v4990_v5, %v4989_v2  ;;  %v469_v12 = vld [vmem:[%s7291_s3 + $0x18] sm:$0xff] (!%p412_p2)  ;;  %v4991_v13 = vld [vmem:[%s7291_s3 + $0x60] sm:$0xff] (!%p412_p2)  ;;  %vm632_vm2 = vcmask (!%p412_p2), 31744   ;;  %vm639_vm3 = vcmask (!%p412_p2), 1043456  }
   0x8   : > { %5998 = vmatpush3.bf16.msra.mxu1 (!%p412_p2), %v5997_v4  ;;  %v4992_v14 = vld [vmem:[%s7291_s3 + $0x68] sm:$0xff] (!%p412_p2)  ;;  %v5988_v15 = vpack.c.bf16 (!%p412_p2), %v469_v12, %v468_v9  ;;  %v470_v16 = vld [vmem:[%s7291_s3 + $0x20] sm:$0xff] (!%p412_p2)  ;;  %v4993_v19 = vld [vmem:[%s7291_s3 + $0x70] sm:$0xff] (!%p412_p2)  ;;  %v6433_v1 = vmov (!%p412_p2), 0   ;;  %vm1174_vm4 = vcmask (!%p412_p2), 261120   ;;  %vm1341_vm5 = vcmask (!%p412_p2), 130048  }
   0x9   : > { %5999 = vmatprep.subr.bf16.mxu1 (!%p412_p2), %v6430_v3  ;;  %5986 = vmatpush3.bf16.msra.mxu0 (!%p412_p2), %v5985_v8  ;;  %v471_v17 = vld [vmem:[%s7291_s3 + $0x28] sm:$0xff] (!%p412_p2)  ;;  %v6003_v18 = vpack.c.bf16 (!%p412_p2), %v4992_v14, %v4991_v13  ;;  %v4994_v20 = vld [vmem:[%s7291_s3 + $0x78] sm:$0xff] (!%p412_p2)  ;;  %v472_v22 = vld [vmem:[%s7291_s3 + $0x30] sm:$0xff] (!%p412_p2) }
   0xa   : > { %5987 = vmatprep.subr.bf16.mxu0 (!%p412_p2), %v6430_v3  ;;  %v5991_v21 = vpack.c.bf16 (!%p412_p2), %v471_v17, %v470_v16  ;;  %v473_v23 = vld [vmem:[%s7291_s3 + $0x38] sm:$0xff] (!%p412_p2)  ;;  %v6006_v24 = vpack.c.bf16 (!%p412_p2), %v4994_v20, %v4993_v19  ;;  %v5004_v25 = vld [vmem:[%s7291_s3 + $0x80] sm:$0xff] (!%p412_p2)  ;;  %v5005_v26 = vld [vmem:[%s7291_s3 + $0x88] sm:$0xff] (!%p412_p2)  ;;  %6292 = vset.pattern.permute.xlu0 (!%p412_p2), %v6433_v1 }
   0xb   : > { %v5994_v27 = vpack.c.bf16 (!%p412_p2), %v473_v23, %v472_v22  ;;  %v6009_v29 = vpack.c.bf16 (!%p412_p2), %v5005_v26, %v5004_v25  ;;  %v5006_v30 = vld [vmem:[%s7291_s3 + $0x90] sm:$0xff] (!%p412_p2)  ;;  %v5007_v31 = vld [vmem:[%s7291_s3 + $0x98] sm:$0xff] (!%p412_p2)  ;;  %v5008_v33 = vld [vmem:[%s7291_s3 + $0xa0] sm:$0xff] (!%p412_p2)  ;;  %6293 = vset.pattern.permute.xlu1 (!%p412_p2), %v6433_v1 }
   0xc   : > { %6001 = vmatpush3.bf16.msra.mxu1 (!%p412_p2), %v6000_v11  ;;  %v6012_v32 = vpack.c.bf16 (!%p412_p2), %v5007_v31, %v5006_v30  ;;  %v5009_v34 = vld [vmem:[%s7291_s3 + $0xa8] sm:$0xff] (!%p412_p2)  ;;  %v5010_v36 = vld [vmem:[%s7291_s3 + $0xb0] sm:$0xff] (!%p412_p2)  ;;  %v5011_v37 = vld [vmem:[%s7291_s3 + $0xb8] sm:$0xff] (!%p412_p2) }
   0xd   : > { %s7305_s30 = smov (!%p6539_p3, %s4978_s30), 1  ;;  %6002 = vmatprep.subr.bf16.mxu1 %v6430_v3  ;;  %5989 = vmatpush3.bf16.msra.mxu0 %v5988_v15  ;;  %v6015_v35 = vpack.c.bf16 %v5009_v34, %v5008_v33  ;;  %v6018_v38 = vpack.c.bf16 %v5011_v37, %v5010_v36  ;;  %v4996_v39 = vld [vmem:[%s7289_s1 + $0x10] sm:$0xff]  ;;  %v4997_v41 = vld [vmem:[%s7289_s1 + $0x18] sm:$0xff]  ;;  %v548_v44 = vld [vmem:[%s7289_s1] sm:$0xff] }
   0xe   : > { %5990 = vmatprep.subr.bf16.mxu0 %v6430_v3  ;;  %s4983_s27 = sshll.u32 %s7305_s30, 2  ;;  %v549_v46 = vld [vmem:[%s7289_s1 + $0x8] sm:$0xff]  ;;  %v5013_v47 = vld [vmem:[%s7289_s1 + $0x20] sm:$0xff]  ;;  %v5020_v54 = vld [vmem:[%s7291_s3 + $0xd0] sm:$0xff]  ;;  %s5238_s22 = sshll.u32 %s7305_s30, 5 }
   0xf   : > { %s459_s23 = scalar_lea.vmem %s7288_s0, %s4983_s27  ;;  %v5018_v48 = vld [vmem:[%s7291_s3 + $0xc0] sm:$0xff]  ;;  %v5019_v49 = vld [vmem:[%s7291_s3 + $0xc8] sm:$0xff]  ;;  %v5021_v55 = vld [vmem:[%s7291_s3 + $0xd8] sm:$0xff]  ;;  %s464_s25 = scalar_lea.vmem %s7302_s14, %s5238_s22 }
  0x10   : > { %6004 = vmatpush3.bf16.msra.mxu1 %v6003_v18  ;;  %v6599_v28 = vld [vmem:[%s459_s23] sm:$0xf]  ;;  %v5014_v51 = vld [vmem:[%s7289_s1 + $0x28] sm:$0xff]  ;;  %v6021_v52 = vpack.c.bf16 %v5019_v49, %v5018_v48  ;;  %v6024_v56 = vpack.c.bf16 %v5021_v55, %v5020_v54  ;;  %v5024_v60 = vld [vmem:[%s7291_s3 + $0xf0] sm:$0xff] }
  0x11   : > { %6005 = vmatprep.subr.bf16.mxu1 %v6430_v3  ;;  %5992 = vmatpush3.bf16.msra.mxu0 %v5991_v21  ;;  %v5022_v57 = vld [vmem:[%s7291_s3 + $0xe0] sm:$0xff]  ;;  %v5023_v58 = vld [vmem:[%s7291_s3 + $0xe8] sm:$0xff]  ;;  %v5025_v61 = vld [vmem:[%s7291_s3 + $0xf8] sm:$0xff] }
  0x12   : > { %5993 = vmatprep.subr.bf16.mxu0 %v6430_v3  ;;  %v6027_v59 = vpack.c.bf16 %v5023_v58, %v5022_v57  ;;  %v6030_v62 = vpack.c.bf16 %v5025_v61, %v5024_v60  ;;  %v5027_v63 = vld [vmem:[%s7289_s1 + $0x30] sm:$0xff]  ;;  %v1138_v0 = vld [vmem:[%s7290_s2] sm:$0xff]  ;;  %v1139_v2 = vld [vmem:[%s7290_s2 + $0x8] sm:$0xff] }
  0x13   : > { %1142 = vperm.xlu0 %6292, %v1138_v0   ;;  %v2418_v4 = vld [vmem:[%s7296_s8 + $0x10] sm:$0xff]  ;;  %v3092_v5 = vld [vmem:[%s7299_s11] sm:$0xff]  ;;  %v5028_v18 = vld [vmem:[%s7289_s1 + $0x38] sm:$0xff] }
  0x14   : > { %6007 = vmatpush3.bf16.msra.mxu1 %v6006_v24  ;;  %v3094_v6 = vld [vmem:[%s7299_s11 + $0x10] sm:$0xff]  ;;  %v3261_v7 = vld [vmem:[%s7301_s13] sm:$0xff]  ;;  %v1171_v21 = vld [vmem:[%s7294_s6 + $0x8] sm:$0xff] }
  0x15   : > { %6008 = vmatprep.subr.bf16.mxu1 %v6430_v3  ;;  %5995 = vmatpush3.bf16.msra.mxu0 %v5994_v27  ;;  %v3263_v8 = vld [vmem:[%s7301_s13 + $0x10] sm:$0xff]  ;;  %v5168_v9 = vld [vmem:[%s7299_s11 + $0x20] sm:$0xff]  ;;  %v1173_v24 = vld [vmem:[%s7294_s6 + $0x18] sm:$0xff] }
  0x16   : > { %v5180_v11 = vld [vmem:[%s7301_s13 + $0x20] sm:$0xff]  ;;  %v5182_v12 = vld [vmem:[%s7301_s13 + $0x30] sm:$0xff]  ;;  %v5035_v27 = vld [vmem:[%s7294_s6 + $0x28] sm:$0xff] }
  0x17   : > { %5543 = vmatmul.mubr.msk.f32.vlgmr.msra.gmra.mrb[0].mxu1 %vm474_vm1, %v6599_v28  ;;  %1147 = vperm.xlu0 %6292, %v1139_v2   ;;  %v5220_v13 = vld [vmem:[%s7299_s11 + $0x40] sm:$0xff]  ;;  %v5222_v14 = vld [vmem:[%s7299_s11 + $0x50] sm:$0xff]  ;;  %v5047_v57 = vld [vmem:[%s7294_s6 + $0x48] sm:$0xff] }
  0x18   : > { %6010 = vmatpush3.bf16.msra.mxu1 %v6009_v29  ;;  %5524 = vmatmul.mubr.msk.f32.vlgmr.msra.gmra.mrb[0].mxu0 %vm474_vm1, %v6599_v28  ;;  %v5232_v15 = vld [vmem:[%s7301_s13 + $0x40] sm:$0xff]  ;;  %v5234_v16 = vld [vmem:[%s7301_s13 + $0x50] sm:$0xff]  ;;  %v5049_v60 = vld [vmem:[%s7294_s6 + $0x58] sm:$0xff] }
  0x19   : > { %6011 = vmatprep.subr.bf16.mxu1 %v6430_v3  ;;  %5571 = vmatprep.mubr.msk.f32.mxu1 %vm6431_vm0, %v6432_v10  ;;  %v1170_v20 = vld [vmem:[%s7294_s6] sm:$0xff]  ;;  %v1172_v23 = vld [vmem:[%s7294_s6 + $0x10] sm:$0xff]  ;;  %v5059_v2 = vld [vmem:[%s7294_s6 + $0x78] sm:$0xff] }
  0x1a   : > { %5547 = vmatprep.mubr.msk.f32.mxu0 %vm632_vm2, %v4996_v39  ;;  %v6032_v22 = vpack.c.bf16 %v1171_v21, %v1170_v20  ;;  %v6036_v25 = vpack.c.bf16 %v1173_v24, %v1172_v23  ;;  %v5034_v26 = vld [vmem:[%s7294_s6 + $0x20] sm:$0xff]  ;;  %v5036_v49 = vld [vmem:[%s7294_s6 + $0x30] sm:$0xff]  ;;  %v5235_v20 = vld [vmem:[%s7301_s13 + $0x58] sm:$0xff] }
  0x1b   : > { %v5058_v1 = vld [vmem:[%s7294_s6 + $0x70] sm:$0xff] }
  0x1c   : > { %6013 = vmatpush3.bf16.msra.mxu1 %v6012_v32 }
  0x1d   : > { %6014 = vmatprep.subr.bf16.mxu1 %v6430_v3 }
  0x20   : > { %6016 = vmatpush3.bf16.msra.mxu1 %v6015_v35 }
  0x21   : > { %6017 = vmatprep.subr.bf16.mxu1 %v6430_v3 }
  0x24   : > { %6019 = vmatpush3.bf16.msra.mxu1 %v6018_v38 }
  0x25   : > { %6033 = vmatprep.subr.bf16.mxu1 %v6032_v22 }
  0x27   : > { %5572 = vmatmul.mubr.msk.f32.vlgmr.msra.gmra.mrb[2].mxu1 %vm474_vm1, %v6599_v28 }
  0x28   : > { %6035 = vmatpush3.bf16.msra.mxu1 %v6032_v22 }
  0x29   : > { %6037 = vmatprep.subr.bf16.mxu1 %v6036_v25 }
  0x2c   : > { %6039 = vmatpush3.bf16.msra.mxu1 %v6036_v25 }
  0x92   : > { %v1143_v29 = vpop.permute.xlu0 %1142 }
  0x96   : > { %v1148_v30 = vpop.permute.xlu0 %1147 }
  0xea   : > { %v625_v40 = vpop.f32.mrb[0].mxu1 }
  0xeb   : > { %v5544_v42 = vpop.f32.mrb[1].mxu1  ;;  %5545 = vmatprep.subr.msk.mxu0 %vm639_vm3, %v625_v40  ;;  %v544_v43 = vpop.f32.mrb[0].mxu0 }
  0xec   : > { %5546 = vmatpush3.msk.msra.mxu0 %vm639_vm3, %v625_v40  ;;  %v5525_v45 = vpop.f32.mrb[1].mxu0 }
  0xed   : > { %5548 = vmatmul.mubr.msk.f32.vlgmr.msra.gmra.mrb[2].mxu0 %vm632_vm2, %v4997_v41  ;;  %5550 = vmatprep.subr.msk.mxu0 %vm639_vm3, %v544_v43 }
  0xee   : > { %5551 = vmatpush3.msk.msra.mxu0 %vm639_vm3, %v544_v43  ;;  %5552 = vmatprep.mubr.msk.f32.mxu0 %vm632_vm2, %v548_v44 }
  0xf5   : > { %5553 = vmatmul.mubr.msk.f32.vlgmr.msra.gmra.mrb[2].mxu0 %vm632_vm2, %v549_v46 }
  0xf6   : > { %5576 = vmatprep.mubr.msk.f32.mxu0 %vm632_vm2, %v5013_v47 }
  0xfa   : > { %v877_v50 = vpop.f32.mrb[2].mxu1 }
  0xfb   : > { %v5573_v53 = vpop.f32.mrb[3].mxu1  ;;  %5574 = vmatprep.subr.msk.mxu0 %vm639_vm3, %v877_v50 }
  0xfc   : > { %5575 = vmatpush3.msk.msra.mxu0 %vm639_vm3, %v877_v50  ;;  %v5037_v50 = vld [vmem:[%s7294_s6 + $0x38] sm:$0xff] }
  0xfd   : > { %6020 = vmatprep.subr.bf16.mxu0 %v6430_v3  ;;  %5577 = vmatmul.mubr.msk.f32.vlgmr.msra.gmra.mrb[2].mxu0 %vm632_vm2, %v5014_v51  ;;  %v6044_v55 = vpack.c.bf16 %v5037_v50, %v5036_v49 }
  0xfe   : > { %6022 = vmatpush3.bf16.msra.mxu0 %v6021_v52  ;;  %5595 = vmatprep.mubr.msk.f32.mxu0 %vm6431_vm0, %v6432_v10  ;;  %v5170_v10 = vld [vmem:[%s7299_s11 + $0x30] sm:$0xff] }
  0xff   : > { %6023 = vmatprep.subr.bf16.mxu0 %v6430_v3 }
 0x102   : > { %6025 = vmatpush3.bf16.msra.mxu0 %v6024_v56  ;;  %v5046_v56 = vld [vmem:[%s7294_s6 + $0x40] sm:$0xff] }
 0x103   : > { %6026 = vmatprep.subr.bf16.mxu0 %v6430_v3  ;;  %v6056_v58 = vpack.c.bf16 %v5047_v57, %v5046_v56 }
 0x106   : > { %6028 = vmatpush3.bf16.msra.mxu0 %v6027_v59  ;;  %v5048_v59 = vld [vmem:[%s7294_s6 + $0x50] sm:$0xff] }
 0x107   : > { %6029 = vmatprep.subr.bf16.mxu0 %v6430_v3  ;;  %v2416_v3 = vld [vmem:[%s7296_s8] sm:$0xff]  ;;  %v6060_v61 = vpack.c.bf16 %v5049_v60, %v5048_v59 }
 0x108   : > { %2422 = vperm.xlu0 %6292, %v2416_v3   ;;  %v6072_v3 = vpack.c.bf16 %v5059_v2, %v5058_v1 }
 0x10a   : > { %6031 = vmatpush3.bf16.msra.mxu0 %v6030_v62  ;;  %v5056_v62 = vld [vmem:[%s7294_s6 + $0x60] sm:$0xff] }
 0x10c   : > { %2432 = vperm.xlu0 %6292, %v2418_v4   ;;  %v5040_v4 = vld [vmem:[%s7292_s4 + $0x10] sm:$0xff] }
 0x10d   : > { %5596 = vmatmul.mubr.msk.f32.vlgmr.msra.gmra.mrb[4].mxu0 %vm474_vm1, %v6599_v28  ;;  %v6040_v28 = vpack.c.bf16 %v5035_v27, %v5034_v26  ;;  %v5041_v27 = vld [vmem:[%s7292_s4 + $0x18] sm:$0xff] }
 0x10e   : > { %5600 = vmatprep.mubr.msk.f32.mxu0 %vm632_vm2, %v5027_v63  ;;  %v5057_v63 = vld [vmem:[%s7294_s6 + $0x68] sm:$0xff] }
 0x10f   : > { %6041 = vmatprep.subr.bf16.mxu1 %v6040_v28  ;;  %v6068_v0 = vpack.c.bf16 %v5057_v63, %v5056_v62 }
 0x110   : > { %3098 = vperm.xlu0 %6292, %v3092_v5   ;;  %v1836_v5 = vld [vmem:[%s7293_s5] sm:$0xff] }
 0x111   : > { %1840 = vperm.xlu1 %6293, %v1836_v5  }
 0x114   : > { %3108 = vperm.xlu0 %6292, %v3094_v6   ;;  %v1837_v6 = vld [vmem:[%s7293_s5 + $0x8] sm:$0xff] }
 0x115   : > { %1845 = vperm.xlu1 %6293, %v1837_v6  }
 0x118   : > { %3267 = vperm.xlu0 %6292, %v3261_v7   ;;  %v2417_v7 = vld [vmem:[%s7296_s8 + $0x8] sm:$0xff] }
 0x119   : > { %2427 = vperm.xlu1 %6293, %v2417_v7  }
 0x11c   : > { %3277 = vperm.xlu0 %6292, %v3263_v8   ;;  %v2419_v8 = vld [vmem:[%s7296_s8 + $0x18] sm:$0xff] }
 0x11d   : > { %2437 = vperm.xlu1 %6293, %v2419_v8  }
 0x120   : > { %3909 = vperm.xlu0 %6292, %v5168_v9   ;;  %v3093_v9 = vld [vmem:[%s7299_s11 + $0x8] sm:$0xff] }
 0x121   : > { %3103 = vperm.xlu1 %6293, %v3093_v9   ;;  %v5072_v9 = vld [vmem:[%s7295_s7 + $0x20] sm:$0xff] }
 0x124   : > { %3919 = vperm.xlu0 %6292, %v5170_v10   ;;  %v3095_v10 = vld [vmem:[%s7299_s11 + $0x18] sm:$0xff] }
 0x125   : > { %3113 = vperm.xlu1 %6293, %v3095_v10  }
 0x128   : > { %4080 = vperm.xlu0 %6292, %v5180_v11   ;;  %v3262_v11 = vld [vmem:[%s7301_s13 + $0x8] sm:$0xff] }
 0x129   : > { %3272 = vperm.xlu1 %6293, %v3262_v11  }
 0x12c   : > { %4090 = vperm.xlu0 %6292, %v5182_v12   ;;  %v3264_v12 = vld [vmem:[%s7301_s13 + $0x18] sm:$0xff] }
 0x12d   : > { %3282 = vperm.xlu1 %6293, %v3264_v12  }
 0x130   : > { %4722 = vperm.xlu0 %6292, %v5220_v13   ;;  %v5169_v13 = vld [vmem:[%s7299_s11 + $0x28] sm:$0xff] }
 0x131   : > { %3914 = vperm.xlu1 %6293, %v5169_v13  }
 0x134   : > { %4732 = vperm.xlu0 %6292, %v5222_v14   ;;  %v5171_v14 = vld [vmem:[%s7299_s11 + $0x38] sm:$0xff] }
 0x135   : > { %3924 = vperm.xlu1 %6293, %v5171_v14  }
 0x138   : > { %4893 = vperm.xlu0 %6292, %v5232_v15   ;;  %v5181_v15 = vld [vmem:[%s7301_s13 + $0x28] sm:$0xff] }
 0x139   : > { %4085 = vperm.xlu1 %6293, %v5181_v15  }
 0x13c   : > { %4903 = vperm.xlu0 %6292, %v5234_v16   ;;  %v5183_v16 = vld [vmem:[%s7301_s13 + $0x38] sm:$0xff] }
 0x13d   : > { %4095 = vperm.xlu1 %6293, %v5183_v16  }
 0x190   : > { %v1841_v49 = vpop.permute.xlu1 %1840 }
 0x194   : > { %v1846_v50 = vpop.permute.xlu1 %1845 }
 0x1e0   : > { %v1045_v17 = vpop.f32.mrb[4].mxu0 }
 0x1e1   : > { %5598 = vmatprep.subr.msk.mxu0 %vm639_vm3, %v1045_v17  ;;  %v5597_v19 = vpop.f32.mrb[5].mxu0 }
 0x1e2   : > { %5599 = vmatpush3.msk.msra.mxu0 %vm639_vm3, %v1045_v17  ;;  %v5221_v17 = vld [vmem:[%s7299_s11 + $0x48] sm:$0xff] }
 0x1e3   : > { %5601 = vmatmul.mubr.msk.f32.vlgmr.msra.gmra.mrb[2].mxu0 %vm632_vm2, %v5028_v18  ;;  %4727 = vperm.xlu1 %6293, %v5221_v17   ;;  %v5223_v18 = vld [vmem:[%s7299_s11 + $0x58] sm:$0xff]  ;;  %v5233_v19 = vld [vmem:[%s7301_s13 + $0x48] sm:$0xff] }
 0x1e4   : > { %5629 = vmatprep.mubr.msk.f32.mxu0 %vm1341_vm5, %v5040_v4 }
 0x1e7   : > { %4737 = vperm.xlu1 %6293, %v5223_v18   ;;  %v5073_v18 = vld [vmem:[%s7295_s7 + $0x28] sm:$0xff] }
 0x1eb   : > { %4898 = vperm.xlu1 %6293, %v5233_v19  }
 0x1ef   : > { %4908 = vperm.xlu1 %6293, %v5235_v20   ;;  %v5074_v20 = vld [vmem:[%s7295_s7 + $0x30] sm:$0xff] }
 0x2b6   : > { %v5602_v31 = vpop.f32.mrb[2].mxu0 }
 0x2b7   : > { %v1151_v32 = vadd.f32 %v5602_v31, %v1148_v30  ;;  %v1127_v33 = vpop.f32.mrb[3].mxu0 }
 0x2b8   : > { %v1150_v34 = vadd.f32 %v1143_v29, %v1127_v33  ;;  %v5052_v33 = vld [vmem:[%s7292_s4 + $0x20] sm:$0xff] }
 0x2b9   : > { %v1153_v35 = vmin.f32 %v1151_v32, 20.0 }
 0x2ba   : > { %v1152_v36 = vmin.f32 %v1150_v34, 20.0 }
 0x2bb   : > { %v1156_v37 = vmul.f32 1.442695, %v1153_v35 }
 0x2bc   : > { %v1154_v38 = vmul.f32 1.442695, %v1152_v36 }
 0x2bd   : > { %6294 = vpow2.f32 %v1156_v37  ;;  %v5053_v37 = vld [vmem:[%s7292_s4 + $0x28] sm:$0xff] }
 0x2be   : > { %6296 = vpow2.f32 %v1154_v38  ;;  %v5062_v38 = vld [vmem:[%s7292_s4 + $0x30] sm:$0xff] }
 0x2c7   : > { %v6295_v39 = vpop.eup %6294 }
 0x2c8   : > { %v6297_v40 = vpop.eup %6296  ;;  %v1159_v41 = vadd.f32 2.0, %v6295_v39 }
 0x2c9   : > { %v1158_v42 = vadd.f32 2.0, %v6297_v40 }
 0x2ca   : > { %v1161_v43 = vmul.f32 %v6295_v39, %v1159_v41  ;;  %v5063_v39 = vld [vmem:[%s7292_s4 + $0x38] sm:$0xff]  ;;  %v1869_v41 = vld [vmem:[%s7297_s9 + $0x8] sm:$0xff] }
 0x2cb   : > { %v1160_v44 = vmul.f32 %v6297_v40, %v1158_v42  ;;  %v1868_v40 = vld [vmem:[%s7297_s9] sm:$0xff]  ;;  %v5068_v42 = vld [vmem:[%s7297_s9 + $0x10] sm:$0xff] }
 0x2cc   : > { %v1165_v45 = vadd.f32 2.0, %v1161_v43  ;;  %v1163_v52 = vmul.f32 %v1161_v43, %v1151_v32  ;;  %v1257_v32 = vld [vmem:[%s7292_s4 + $0x8] sm:$0xff]  ;;  %v6896_v43 = vpack.c.bf16 %v1869_v41, %v1868_v40 }
 0x2cd   : > { %v1164_v46 = vadd.f32 2.0, %v1160_v44  ;;  %v1162_v48 = vmul.f32 %v1160_v44, %v1150_v34  ;;  %v5069_v44 = vld [vmem:[%s7297_s9 + $0x18] sm:$0xff] }
 0x2ce   : > { %6298 = vrcp.f32 %v1165_v45  ;;  %v6901_v45 = vpack.c.bf16 %v5069_v44, %v5068_v42 }
 0x2cf   : > { %6300 = vrcp.f32 %v1164_v46  ;;  %v5084_v46 = vld [vmem:[%s7297_s9 + $0x20] sm:$0xff] }
 0x2d8   : > { %v6299_v47 = vpop.eup %6298 }
 0x2d9   : > { %v6301_v51 = vpop.eup %6300  ;;  %v1169_v54 = vmul.f32 %v6299_v47, %v1163_v52  ;;  %v5085_v47 = vld [vmem:[%s7297_s9 + $0x28] sm:$0xff] }
 0x2da   : > { %v1168_v53 = vmul.f32 %v6301_v51, %v1162_v48  ;;  %v6913_v48 = vpack.c.bf16 %v5085_v47, %v5084_v46 }
 0x2dc   : > { %5611 = vmatprep.mubr.msk.f32.mxu1 %vm1174_vm4, %v1168_v53 }
 0x2dd   : > { %5612 = vmatmul.mubr.msk.f32.vlgmr.msra.gmra.mrb[4].mxu1 %vm1174_vm4, %v1169_v54 }
 0x2de   : > { %6043 = vmatpush3.bf16.msra.mxu1 %v6040_v28  ;;  %5622 = vmatprep.mubr.msk.f32.mxu1 %vm1174_vm4, %v1168_v53  ;;  %v1256_v28 = vld [vmem:[%s7292_s4] sm:$0xff] }
 0x2df   : > { %6045 = vmatprep.subr.bf16.mxu1 %v6044_v55 }
 0x2e2   : > { %6047 = vmatpush3.bf16.msra.mxu1 %v6044_v55 }
 0x2e3   : > { %6057 = vmatprep.subr.bf16.mxu1 %v6056_v58 }
 0x2e5   : > { %5623 = vmatmul.mubr.msk.f32.vlgmr.msra.gmra.mrb[6].mxu1 %vm1174_vm4, %v1169_v54 }
 0x2e6   : > { %6059 = vmatpush3.bf16.msra.mxu1 %v6056_v58  ;;  %5647 = vmatprep.mubr.msk.f32.mxu1 %vm1174_vm4, %v1168_v53 }
 0x2e7   : > { %6061 = vmatprep.subr.bf16.mxu1 %v6060_v61 }
 0x2ea   : > { %6063 = vmatpush3.bf16.msra.mxu1 %v6060_v61 }
 0x2eb   : > { %6069 = vmatprep.subr.bf16.mxu1 %v6068_v0 }
 0x2ed   : > { %5648 = vmatmul.mubr.msk.f32.vlgmr.msra.gmra.mrb[8].mxu1 %vm1174_vm4, %v1169_v54 }
 0x2ee   : > { %6071 = vmatpush3.bf16.msra.mxu1 %v6068_v0  ;;  %5665 = vmatprep.mubr.msk.f32.mxu1 %vm1174_vm4, %v1168_v53 }
 0x2ef   : > { %6073 = vmatprep.subr.bf16.mxu1 %v6072_v3 }
 0x2f2   : > { %6075 = vmatpush3.bf16.msra.mxu1 %v6072_v3 }
 0x2f3   : > { %6085 = vmatprep.subr.bf16.mxu1 %v6901_v45 }
 0x2f5   : > { %5666 = vmatmul.mubr.msk.f32.vlgmr.msra.gmra.mrb[10].mxu1 %vm1174_vm4, %v1169_v54 }
 0x2f6   : > { %6087 = vmatpush3.bf16.msra.mxu1 %v6901_v45 }
 0x2f7   : > { %6097 = vmatprep.subr.bf16.mxu1 %v6913_v48 }
 0x3b0   : > { %v5613_v21 = vpop.f32.mrb[4].mxu1 }
 0x3b1   : > { %v1247_v22 = vpop.f32.mrb[5].mxu1 }
 0x3b2   : > { %v6052_v23 = vpack.c.bf16 %v5613_v21, %v1247_v22  ;;  %v5075_v21 = vld [vmem:[%s7295_s7 + $0x38] sm:$0xff]  ;;  %v1951_v22 = vld [vmem:[%s7295_s7] sm:$0xff] }
 0x3b8   : > { %v5624_v24 = vpop.f32.mrb[6].mxu1 }
 0x3b9   : > { %v1329_v25 = vpop.f32.mrb[7].mxu1 }
 0x3ba   : > { %v6048_v26 = vpack.c.bf16 %v5624_v24, %v1329_v25  ;;  %v1953_v24 = vld [vmem:[%s7295_s7 + $0x10] sm:$0xff]  ;;  %v1954_v25 = vld [vmem:[%s7295_s7 + $0x18] sm:$0xff] }
 0x3bc   : > { %6049 = vmatprep.subr.bf16.mxu0 %v6048_v26 }
 0x3bd   : > { %6051 = vmatpush3.bf16.msra.mxu0 %v6048_v26  ;;  %v5088_v26 = vld [vmem:[%s7295_s7 + $0x40] sm:$0xff] }
 0x3be   : > { %6053 = vmatprep.subr.bf16.mxu0 %v6052_v23 }
 0x3c0   : > { %5630 = vmatmul.mubr.msk.f32.vlgmr.msra.gmra.mrb[6].mxu0 %vm1341_vm5, %v5041_v27  ;;  %v5649_v29 = vpop.f32.mrb[8].mxu1  ;;  %v5089_v27 = vld [vmem:[%s7295_s7 + $0x48] sm:$0xff] }
 0x3c1   : > { %6055 = vmatpush3.bf16.msra.mxu0 %v6052_v23  ;;  %v1575_v30 = vpop.f32.mrb[9].mxu1  ;;  %5636 = vmatprep.mubr.msk.f32.mxu0 %vm1341_vm5, %v1256_v28  ;;  %v1952_v23 = vld [vmem:[%s7295_s7 + $0x8] sm:$0xff]  ;;  %v5090_v28 = vld [vmem:[%s7295_s7 + $0x50] sm:$0xff] }
 0x3c2   : > { %v6064_v31 = vpack.c.bf16 %v5649_v29, %v1575_v30  ;;  %v5091_v29 = vld [vmem:[%s7295_s7 + $0x58] sm:$0xff]  ;;  %v2428_v30 = vpop.permute.xlu1 %2427 }
 0x3c4   : > { %6065 = vmatprep.subr.bf16.mxu0 %v6064_v31 }
 0x3c8   : > { %5637 = vmatmul.mubr.msk.f32.vlgmr.msra.gmra.mrb[6].mxu0 %vm1341_vm5, %v1257_v32  ;;  %v5667_v34 = vpop.f32.mrb[10].mxu1 }
 0x3c9   : > { %6067 = vmatpush3.bf16.msra.mxu0 %v6064_v31  ;;  %v1741_v35 = vpop.f32.mrb[11].mxu1  ;;  %5654 = vmatprep.mubr.msk.f32.mxu0 %vm1341_vm5, %v5052_v33  ;;  %v2423_v31 = vpop.permute.xlu0 %2422 }
 0x3ca   : > { %v6076_v36 = vpack.c.bf16 %v5667_v34, %v1741_v35 }
 0x3cc   : > { %6077 = vmatprep.subr.bf16.mxu0 %v6076_v36 }
 0x3cd   : > { %v2433_v40 = vpop.permute.xlu0 %2432 }
 0x3d0   : > { %5655 = vmatmul.mubr.msk.f32.vlgmr.msra.gmra.mrb[6].mxu0 %vm1341_vm5, %v5053_v37  ;;  %v2438_v37 = vpop.permute.xlu1 %2437 }
 0x3d1   : > { %6079 = vmatpush3.bf16.msra.mxu0 %v6076_v36  ;;  %5672 = vmatprep.mubr.msk.f32.mxu0 %vm1341_vm5, %v5062_v38 }
 0x3d2   : > { %6081 = vmatprep.subr.bf16.mxu0 %v6896_v43 }
 0x3d8   : > { %5673 = vmatmul.mubr.msk.f32.vlgmr.msra.gmra.mrb[6].mxu0 %vm1341_vm5, %v5063_v39 }
 0x3d9   : > { %6083 = vmatpush3.bf16.msra.mxu0 %v6896_v43 }
 0x4ab   : > { %v5674_v51 = vpop.f32.mrb[6].mxu0 }
 0x4ac   : > { %v1849_v52 = vadd.f32 %v5674_v51, %v1846_v50  ;;  %v1825_v53 = vpop.f32.mrb[7].mxu0 }
 0x4ad   : > { %v1848_v54 = vadd.f32 %v1841_v49, %v1825_v53 }
 0x4ae   : > { %v1851_v55 = vmin.f32 %v1849_v52, 20.0 }
 0x4af   : > { %v1850_v56 = vmin.f32 %v1848_v54, 20.0 }
 0x4b0   : > { %v1854_v57 = vmul.f32 1.442695, %v1851_v55 }
 0x4b1   : > { %v1852_v58 = vmul.f32 1.442695, %v1850_v56 }
 0x4b2   : > { %6302 = vpow2.f32 %v1854_v57 }
 0x4b3   : > { %6304 = vpow2.f32 %v1852_v58 }
 0x4bc   : > { %v6303_v59 = vpop.eup %6302 }
 0x4bd   : > { %v6305_v60 = vpop.eup %6304  ;;  %v1857_v61 = vadd.f32 2.0, %v6303_v59 }
 0x4be   : > { %v1856_v62 = vadd.f32 2.0, %v6305_v60 }
 0x4bf   : > { %v1859_v63 = vmul.f32 %v6303_v59, %v1857_v61 }
 0x4c0   : > { %v1858_v0 = vmul.f32 %v6305_v60, %v1856_v62 }
 0x4c1   : > { %v1863_v1 = vadd.f32 2.0, %v1859_v63  ;;  %v1861_v6 = vmul.f32 %v1859_v63, %v1849_v52 }
 0x4c2   : > { %v1862_v2 = vadd.f32 2.0, %v1858_v0  ;;  %v1860_v4 = vmul.f32 %v1858_v0, %v1848_v54 }
 0x4c3   : > { %6306 = vrcp.f32 %v1863_v1 }
 0x4c4   : > { %6308 = vrcp.f32 %v1862_v2 }
 0x4cd   : > { %v6307_v3 = vpop.eup %6306 }
 0x4ce   : > { %v6309_v5 = vpop.eup %6308  ;;  %v1867_v8 = vmul.f32 %v6307_v3, %v1861_v6 }
 0x4cf   : > { %v1866_v7 = vmul.f32 %v6309_v5, %v1860_v4 }
 0x4d1   : > { %5679 = vmatprep.mubr.msk.f32.mxu0 %vm1341_vm5, %v1866_v7  ;;  %5686 = vmatprep.mubr.msk.f32.mxu1 %vm1341_vm5, %v1866_v7 }
 0x4d2   : > { %5680 = vmatmul.mubr.msk.f32.vlgmr.msra.gmra.mrb[8].mxu0 %vm1341_vm5, %v1867_v8  ;;  %5687 = vmatmul.mubr.msk.f32.vlgmr.msra.gmra.mrb[12].mxu1 %vm1341_vm5, %v1867_v8 }
 0x4d3   : > { %6099 = vmatpush3.bf16.msra.mxu1 %v6913_v48  ;;  %5713 = vmatprep.mubr.msk.f32.mxu1 %vm1341_vm5, %v1866_v7 }
 0x4d4   : > { %6105 = vmatprep.subr.bf16.mxu1 %v6896_v43  ;;  %5693 = vmatprep.mubr.msk.f32.mxu0 %vm1341_vm5, %v5072_v9 }
 0x4d6   : > { %5714 = vmatmul.mubr.msk.f32.vlgmr.msra.gmra.mrb[14].mxu1 %vm1341_vm5, %v1867_v8 }
 0x4d7   : > { %6107 = vmatpush3.bf16.msra.mxu1 %v6896_v43 }
 0x4d8   : > { %6109 = vmatprep.subr.bf16.mxu1 %v6901_v45 }
 0x5a5   : > { %v5681_v10 = vpop.f32.mrb[8].mxu0  ;;  %v5688_v11 = vpop.f32.mrb[12].mxu1 }
 0x5a6   : > { %v1942_v12 = vpop.f32.mrb[9].mxu0  ;;  %v2024_v13 = vpop.f32.mrb[13].mxu1 }
 0x5a7   : > { %v6092_v14 = vpack.c.bf16 %v5681_v10, %v1942_v12  ;;  %v6088_v15 = vpack.c.bf16 %v5688_v11, %v2024_v13 }
 0x5a9   : > { %6089 = vmatprep.subr.bf16.mxu0 %v6088_v15  ;;  %v5715_v16 = vpop.f32.mrb[14].mxu1 }
 0x5aa   : > { %6091 = vmatpush3.bf16.msra.mxu0 %v6088_v15  ;;  %v2301_v17 = vpop.f32.mrb[15].mxu1 }
 0x5ab   : > { %v6100_v19 = vpack.c.bf16 %v5715_v16, %v2301_v17  ;;  %6093 = vmatprep.subr.bf16.mxu0 %v6092_v14 }
 0x5ad   : > { %5694 = vmatmul.mubr.msk.f32.vlgmr.msra.gmra.mrb[10].mxu0 %vm1341_vm5, %v5073_v18 }
 0x5ae   : > { %6095 = vmatpush3.bf16.msra.mxu0 %v6092_v14  ;;  %5696 = vmatprep.mubr.msk.f32.mxu0 %vm1341_vm5, %v5074_v20 }
 0x5af   : > { %6101 = vmatprep.subr.bf16.mxu0 %v6100_v19 }
 0x5b1   : > { %5697 = vmatmul.mubr.msk.f32.gmra.mrb[12].mxu0 %vm1341_vm5, %v5075_v21 }
 0x5b2   : > { %5703 = vmatprep.mubr.msk.f32.mxu0 %vm1341_vm5, %v1951_v22 }
 0x5b5   : > { %5704 = vmatmul.mubr.msk.f32.vlgmr.msra.gmra.mrb[10].mxu0 %vm1341_vm5, %v1952_v23 }
 0x5b6   : > { %6103 = vmatpush3.bf16.msra.mxu0 %v6100_v19  ;;  %5706 = vmatprep.mubr.msk.f32.mxu0 %vm1341_vm5, %v1953_v24 }
 0x5b7   : > { %6129 = vmatprep.subr.bf16.mxu0 %v6913_v48 }
 0x5b9   : > { %5707 = vmatmul.mubr.msk.f32.gmra.mrb[12].mxu0 %vm1341_vm5, %v1954_v25 }
 0x5ba   : > { %5720 = vmatprep.mubr.msk.f32.mxu0 %vm1341_vm5, %v5088_v26 }
 0x5bd   : > { %5721 = vmatmul.mubr.msk.f32.vlgmr.msra.gmra.mrb[10].mxu0 %vm1341_vm5, %v5089_v27 }
 0x5be   : > { %5723 = vmatprep.mubr.msk.f32.mxu0 %vm1341_vm5, %v5090_v28  ;;  %6131 = vmatpush3.bf16.msra.mxu0 %v6913_v48 }
 0x5c1   : > { %5724 = vmatmul.mubr.msk.f32.gmra.mrb[12].mxu0 %vm1341_vm5, %v5091_v29 }
 0x690   : > { %v5722_v32 = vpop.f32.mrb[10].mxu0 }
 0x691   : > { %v2441_v33 = vadd.f32 %v5722_v32, %v2428_v30  ;;  %v2393_v34 = vpop.f32.mrb[11].mxu0 }
 0x692   : > { %v2440_v35 = vadd.f32 %v2423_v31, %v2393_v34 }
 0x693   : > { %v2445_v36 = vmin.f32 %v2441_v33, 20.0 }
 0x694   : > { %v2444_v38 = vmin.f32 %v2440_v35, 20.0  ;;  %v5725_v39 = vpop.f32.mrb[12].mxu0 }
 0x695   : > { %v2450_v41 = vmul.f32 1.442695, %v2445_v36  ;;  %v2443_v42 = vadd.f32 %v5725_v39, %v2438_v37  ;;  %v2403_v44 = vpop.f32.mrb[13].mxu0 }
 0x696   : > { %v2448_v46 = vmul.f32 1.442695, %v2444_v38  ;;  %v2442_v47 = vadd.f32 %v2433_v40, %v2403_v44 }
 0x697   : > { %6310 = vpow2.f32 %v2450_v41  ;;  %v2447_v49 = vmin.f32 %v2443_v42, 20.0 }
 0x698   : > { %6312 = vpow2.f32 %v2448_v46  ;;  %v2446_v50 = vmin.f32 %v2442_v47, 20.0 }
 0x699   : > { %v2454_v51 = vmul.f32 1.442695, %v2447_v49 }
 0x69a   : > { %v2452_v52 = vmul.f32 1.442695, %v2446_v50 }
 0x69b   : > { %6314 = vpow2.f32 %v2454_v51 }
 0x69c   : > { %6316 = vpow2.f32 %v2452_v52 }
 0x6a1   : > { %v6311_v53 = vpop.eup %6310 }
 0x6a2   : > { %v6313_v54 = vpop.eup %6312  ;;  %v2457_v55 = vadd.f32 2.0, %v6311_v53 }
 0x6a3   : > { %v2456_v56 = vadd.f32 2.0, %v6313_v54 }
 0x6a4   : > { %v2461_v57 = vmul.f32 %v6311_v53, %v2457_v55 }
 0x6a5   : > { %v6315_v58 = vpop.eup %6314  ;;  %v2460_v59 = vmul.f32 %v6313_v54, %v2456_v56  ;;  %v5104_v56 = vld [vmem:[%s7298_s10 + $0x20] sm:$0xff] }
 0x6a6   : > { %v6317_v60 = vpop.eup %6316  ;;  %v2469_v61 = vadd.f32 2.0, %v2461_v57  ;;  %v2459_v62 = vadd.f32 2.0, %v6315_v58  ;;  %v2465_v5 = vmul.f32 %v2461_v57, %v2441_v33 }
 0x6a7   : > { %v2468_v63 = vadd.f32 2.0, %v2460_v59  ;;  %v2458_v0 = vadd.f32 2.0, %v6317_v60  ;;  %v2464_v7 = vmul.f32 %v2460_v59, %v2440_v35 }
 0x6a8   : > { %6318 = vrcp.f32 %v2469_v61  ;;  %v2463_v1 = vmul.f32 %v6315_v58, %v2459_v62 }
 0x6a9   : > { %6320 = vrcp.f32 %v2468_v63  ;;  %v2462_v2 = vmul.f32 %v6317_v60, %v2458_v0 }
 0x6aa   : > { %v2471_v3 = vadd.f32 2.0, %v2463_v1  ;;  %v2467_v12 = vmul.f32 %v2463_v1, %v2443_v42 }
 0x6ab   : > { %v2470_v4 = vadd.f32 2.0, %v2462_v2  ;;  %v2466_v15 = vmul.f32 %v2462_v2, %v2442_v47 }
 0x6ac   : > { %6322 = vrcp.f32 %v2471_v3 }
 0x6ad   : > { %6324 = vrcp.f32 %v2470_v4 }
 0x6b2   : > { %v6319_v6 = vpop.eup %6318 }
 0x6b3   : > { %v6321_v8 = vpop.eup %6320  ;;  %v6976_v9 = vmul.f32 %v6319_v6, %v2465_v5 }
 0x6b4   : > { %v6978_v10 = vmul.f32 %v6321_v8, %v2464_v7 }
 0x6b5   : > { %v2481_v11 = vmin.f32 %v6976_v9, 20.0 }
 0x6b6   : > { %v6323_v13 = vpop.eup %6322  ;;  %v2480_v14 = vmin.f32 %v6978_v10, 20.0 }
 0x6b7   : > { %v6325_v16 = vpop.eup %6324  ;;  %v2486_v17 = vmul.f32 1.442695, %v2481_v11  ;;  %v6982_v18 = vmul.f32 %v6323_v13, %v2467_v12  ;;  %v5105_v13 = vld [vmem:[%s7298_s10 + $0x28] sm:$0xff] }
 0x6b8   : > { %v2484_v19 = vmul.f32 1.442695, %v2480_v14  ;;  %v6984_v20 = vmul.f32 %v6325_v16, %v2466_v15  ;;  %v5106_v14 = vld [vmem:[%s7298_s10 + $0x30] sm:$0xff]  ;;  %v5107_v15 = vld [vmem:[%s7298_s10 + $0x38] sm:$0xff]  ;;  %v2613_v16 = vld [vmem:[%s7298_s10] sm:$0xff] }
 0x6b9   : > { %6326 = vpow2.f32 %v2486_v17  ;;  %v2483_v21 = vmin.f32 %v6982_v18, 20.0  ;;  %v2614_v17 = vld [vmem:[%s7298_s10 + $0x8] sm:$0xff] }
 0x6ba   : > { %6328 = vpow2.f32 %v2484_v19  ;;  %v2482_v22 = vmin.f32 %v6984_v20, 20.0  ;;  %v2615_v19 = vld [vmem:[%s7298_s10 + $0x10] sm:$0xff] }
 0x6bb   : > { %v2490_v23 = vmul.f32 1.442695, %v2483_v21  ;;  %v2616_v21 = vld [vmem:[%s7298_s10 + $0x18] sm:$0xff] }
 0x6bc   : > { %v2488_v24 = vmul.f32 1.442695, %v2482_v22  ;;  %v5120_v22 = vld [vmem:[%s7298_s10 + $0x40] sm:$0xff] }
 0x6bd   : > { %6330 = vpow2.f32 %v2490_v23  ;;  %v5121_v23 = vld [vmem:[%s7298_s10 + $0x48] sm:$0xff] }
 0x6be   : > { %6332 = vpow2.f32 %v2488_v24  ;;  %v5122_v24 = vld [vmem:[%s7298_s10 + $0x50] sm:$0xff] }
 0x6c3   : > { %v6327_v25 = vpop.eup %6326 }
 0x6c4   : > { %v6329_v26 = vpop.eup %6328  ;;  %v2493_v27 = vadd.f32 2.0, %v6327_v25 }
 0x6c5   : > { %v2492_v28 = vadd.f32 2.0, %v6329_v26 }
 0x6c6   : > { %v2497_v29 = vmul.f32 %v6327_v25, %v2493_v27  ;;  %v5123_v25 = vld [vmem:[%s7298_s10 + $0x58] sm:$0xff]  ;;  %v3104_v27 = vpop.permute.xlu1 %3103 }
 0x6c7   : > { %v6331_v30 = vpop.eup %6330  ;;  %v2496_v31 = vmul.f32 %v6329_v26, %v2492_v28  ;;  %v3156_v26 = vld [vmem:[%s7300_s12] sm:$0xff]  ;;  %v3099_v28 = vpop.permute.xlu0 %3098 }
 0x6c8   : > { %v6333_v32 = vpop.eup %6332  ;;  %v2505_v33 = vadd.f32 2.0, %v2497_v29  ;;  %v2495_v34 = vadd.f32 2.0, %v6331_v30  ;;  %v2501_v46 = vmul.f32 %v2497_v29, %v6976_v9 }
 0x6c9   : > { %v2504_v35 = vadd.f32 2.0, %v2496_v31  ;;  %v2494_v36 = vadd.f32 2.0, %v6333_v32  ;;  %v2500_v42 = vmul.f32 %v2496_v31, %v6978_v10 }
 0x6ca   : > { %6334 = vrcp.f32 %v2505_v33  ;;  %v2499_v37 = vmul.f32 %v6331_v30, %v2495_v34  ;;  %v3114_v34 = vpop.permute.xlu1 %3113 }
 0x6cb   : > { %6336 = vrcp.f32 %v2504_v35  ;;  %v2498_v38 = vmul.f32 %v6333_v32, %v2494_v36 }
 0x6cc   : > { %v2507_v39 = vadd.f32 2.0, %v2499_v37  ;;  %v2503_v53 = vmul.f32 %v2499_v37, %v6982_v18  ;;  %v3109_v37 = vpop.permute.xlu0 %3108 }
 0x6cd   : > { %v2506_v40 = vadd.f32 2.0, %v2498_v38  ;;  %v2502_v51 = vmul.f32 %v2498_v38, %v6984_v20 }
 0x6ce   : > { %6338 = vrcp.f32 %v2507_v39 }
 0x6cf   : > { %6340 = vrcp.f32 %v2506_v40 }
 0x6d4   : > { %v6335_v41 = vpop.eup %6334 }
 0x6d5   : > { %v6337_v44 = vpop.eup %6336  ;;  %v2513_v49 = vmul.f32 %v6335_v41, %v2501_v46 }
 0x6d6   : > { %v2512_v47 = vmul.f32 %v6337_v44, %v2500_v42 }
 0x6d8   : > { %v6339_v50 = vpop.eup %6338  ;;  %5730 = vmatprep.mubr.msk.f32.mxu1 %vm1341_vm5, %v2512_v47  ;;  %5778 = vmatprep.mubr.msk.f32.mxu0 %vm1341_vm5, %v2512_v47 }
 0x6d9   : > { %v6341_v52 = vpop.eup %6340  ;;  %5731 = vmatmul.mubr.msk.f32.vlgmr.msra.gmra.mrb[16].mxu1 %vm1341_vm5, %v2513_v49  ;;  %5779 = vmatmul.mubr.msk.f32.vlgmr.msra.gmra.mrb[14].mxu0 %vm1341_vm5, %v2513_v49  ;;  %v2515_v55 = vmul.f32 %v6339_v50, %v2503_v53 }
 0x6da   : > { %v2514_v54 = vmul.f32 %v6341_v52, %v2502_v51  ;;  %6111 = vmatpush3.bf16.msra.mxu1 %v6901_v45 }
 0x6dc   : > { %5733 = vmatprep.mubr.msk.f32.mxu1 %vm1341_vm5, %v2514_v54  ;;  %5781 = vmatprep.mubr.msk.f32.mxu0 %vm1341_vm5, %v2514_v54 }
 0x6dd   : > { %5734 = vmatmul.mubr.msk.f32.gmra.mrb[18].mxu1 %vm1341_vm5, %v2515_v55  ;;  %5782 = vmatmul.mubr.msk.f32.gmra.mrb[16].mxu0 %vm1341_vm5, %v2515_v55 }
 0x6de   : > { %5740 = vmatprep.mubr.msk.f32.mxu1 %vm1341_vm5, %v2512_v47  ;;  %5806 = vmatprep.mubr.msk.f32.mxu0 %vm1174_vm4, %v3156_v26 }
 0x6e1   : > { %5741 = vmatmul.mubr.msk.f32.vlgmr.msra.gmra.mrb[20].mxu1 %vm1341_vm5, %v2513_v49 }
 0x6e2   : > { %5743 = vmatprep.mubr.msk.f32.mxu1 %vm1341_vm5, %v2514_v54 }
 0x6e5   : > { %5744 = vmatmul.mubr.msk.f32.gmra.mrb[22].mxu1 %vm1341_vm5, %v2515_v55 }
 0x6e6   : > { %5754 = vmatprep.mubr.msk.f32.mxu1 %vm1174_vm4, %v5104_v56 }
 0x7ac   : > { %v5732_v57 = vpop.f32.mrb[16].mxu1  ;;  %v5780_v58 = vpop.f32.mrb[14].mxu0 }
 0x7ad   : > { %v2594_v59 = vpop.f32.mrb[17].mxu1  ;;  %v2967_v60 = vpop.f32.mrb[15].mxu0 }
 0x7ae   : > { %v6120_v61 = vpack.c.bf16 %v5732_v57, %v2594_v59  ;;  %v6132_v62 = vpack.c.bf16 %v5780_v58, %v2967_v60 }
 0x7b0   : > { %v5735_v63 = vpop.f32.mrb[18].mxu1  ;;  %v5783_v0 = vpop.f32.mrb[16].mxu0 }
 0x7b1   : > { %v2604_v1 = vpop.f32.mrb[19].mxu1  ;;  %v2977_v2 = vpop.f32.mrb[17].mxu0 }
 0x7b2   : > { %v6124_v3 = vpack.c.bf16 %v5735_v63, %v2604_v1  ;;  %v6136_v4 = vpack.c.bf16 %v5783_v0, %v2977_v2 }
 0x7b4   : > { %v5742_v5 = vpop.f32.mrb[20].mxu1 }
 0x7b5   : > { %v2683_v6 = vpop.f32.mrb[21].mxu1 }
 0x7b6   : > { %v6112_v7 = vpack.c.bf16 %v5742_v5, %v2683_v6 }
 0x7b8   : > { %v5745_v8 = vpop.f32.mrb[22].mxu1  ;;  %6113 = vmatprep.subr.bf16.mxu1 %v6112_v7 }
 0x7b9   : > { %v2693_v11 = vpop.f32.mrb[23].mxu1  ;;  %6115 = vmatpush3.bf16.msra.mxu1 %v6112_v7 }
 0x7ba   : > { %v6116_v12 = vpack.c.bf16 %v5745_v8, %v2693_v11 }
 0x7bc   : > { %6117 = vmatprep.subr.bf16.mxu1 %v6116_v12 }
 0x7bd   : > { %6119 = vmatpush3.bf16.msra.mxu1 %v6116_v12 }
 0x7be   : > { %6121 = vmatprep.subr.bf16.mxu1 %v6120_v61 }
 0x7c0   : > { %5755 = vmatmul.mubr.msk.f32.vlgmr.msra.gmra.mrb[24].mxu1 %vm1174_vm4, %v5105_v13 }
 0x7c1   : > { %6123 = vmatpush3.bf16.msra.mxu1 %v6120_v61  ;;  %5757 = vmatprep.mubr.msk.f32.mxu1 %vm1174_vm4, %v5106_v14 }
 0x7c2   : > { %6125 = vmatprep.subr.bf16.mxu1 %v6124_v3 }
 0x7c4   : > { %5758 = vmatmul.mubr.msk.f32.gmra.mrb[26].mxu1 %vm1174_vm4, %v5107_v15 }
 0x7c5   : > { %6127 = vmatpush3.bf16.msra.mxu1 %v6124_v3  ;;  %5768 = vmatprep.mubr.msk.f32.mxu1 %vm1174_vm4, %v2613_v16 }
 0x7c6   : > { %6133 = vmatprep.subr.bf16.mxu1 %v6132_v62 }
 0x7c8   : > { %5769 = vmatmul.mubr.msk.f32.vlgmr.msra.gmra.mrb[24].mxu1 %vm1174_vm4, %v2614_v17 }
 0x7c9   : > { %6135 = vmatpush3.bf16.msra.mxu1 %v6132_v62  ;;  %5771 = vmatprep.mubr.msk.f32.mxu1 %vm1174_vm4, %v2615_v19  ;;  %v3157_v19 = vld [vmem:[%s7300_s12 + $0x8] sm:$0xff] }
 0x7ca   : > { %6137 = vmatprep.subr.bf16.mxu1 %v6136_v4 }
 0x7cc   : > { %5772 = vmatmul.mubr.msk.f32.gmra.mrb[26].mxu1 %vm1174_vm4, %v2616_v21  ;;  %v3158_v21 = vld [vmem:[%s7300_s12 + $0x10] sm:$0xff] }
 0x7cd   : > { %6139 = vmatpush3.bf16.msra.mxu1 %v6136_v4  ;;  %5792 = vmatprep.mubr.msk.f32.mxu1 %vm1174_vm4, %v5120_v22  ;;  %v3159_v22 = vld [vmem:[%s7300_s12 + $0x18] sm:$0xff] }
 0x7ce   : > { %6153 = vmatprep.subr.bf16.mxu1 %v6901_v45 }
 0x7d0   : > { %5793 = vmatmul.mubr.msk.f32.vlgmr.msra.gmra.mrb[24].mxu1 %vm1174_vm4, %v5121_v23  ;;  %v3273_v23 = vpop.permute.xlu1 %3272 }
 0x7d1   : > { %5795 = vmatprep.mubr.msk.f32.mxu1 %vm1174_vm4, %v5122_v24  ;;  %6155 = vmatpush3.bf16.msra.mxu1 %v6901_v45 }
 0x7d2   : > { %6173 = vmatprep.subr.bf16.mxu1 %v6913_v48 }
 0x7d4   : > { %5796 = vmatmul.mubr.msk.f32.gmra.mrb[26].mxu1 %vm1174_vm4, %v5123_v25  ;;  %v3268_v25 = vpop.permute.xlu0 %3267 }
 0x8a3   : > { %v5794_v29 = vpop.f32.mrb[24].mxu1 }
 0x8a4   : > { %v3117_v30 = vadd.f32 %v5794_v29, %v3104_v27  ;;  %v3069_v31 = vpop.f32.mrb[25].mxu1 }
 0x8a5   : > { %v3116_v32 = vadd.f32 %v3099_v28, %v3069_v31 }
 0x8a6   : > { %v3121_v33 = vmin.f32 %v3117_v30, 20.0 }
 0x8a7   : > { %v3120_v35 = vmin.f32 %v3116_v32, 20.0  ;;  %v5797_v36 = vpop.f32.mrb[26].mxu1 }
 0x8a8   : > { %v3126_v38 = vmul.f32 1.442695, %v3121_v33  ;;  %v3119_v39 = vadd.f32 %v5797_v36, %v3114_v34  ;;  %v3079_v40 = vpop.f32.mrb[27].mxu1 }
 0x8a9   : > { %v3124_v41 = vmul.f32 1.442695, %v3120_v35  ;;  %v3118_v42 = vadd.f32 %v3109_v37, %v3079_v40  ;;  %v3283_v35 = vpop.permute.xlu1 %3282 }
 0x8aa   : > { %6342 = vpow2.f32 %v3126_v38  ;;  %v3123_v44 = vmin.f32 %v3119_v39, 20.0  ;;  %v3278_v38 = vpop.permute.xlu0 %3277 }
 0x8ab   : > { %6344 = vpow2.f32 %v3124_v41  ;;  %v3122_v46 = vmin.f32 %v3118_v42, 20.0 }
 0x8ac   : > { %v3130_v47 = vmul.f32 1.442695, %v3123_v44 }
 0x8ad   : > { %v3128_v49 = vmul.f32 1.442695, %v3122_v46 }
 0x8ae   : > { %6346 = vpow2.f32 %v3130_v47 }
 0x8af   : > { %6348 = vpow2.f32 %v3128_v49 }
 0x8b4   : > { %v6343_v50 = vpop.eup %6342 }
 0x8b5   : > { %v6345_v51 = vpop.eup %6344  ;;  %v3133_v52 = vadd.f32 2.0, %v6343_v50 }
 0x8b6   : > { %v3132_v53 = vadd.f32 2.0, %v6345_v51 }
 0x8b7   : > { %v3137_v54 = vmul.f32 %v6343_v50, %v3133_v52 }
 0x8b8   : > { %v6347_v55 = vpop.eup %6346  ;;  %v3136_v56 = vmul.f32 %v6345_v51, %v3132_v53 }
 0x8b9   : > { %v6349_v57 = vpop.eup %6348  ;;  %v3145_v58 = vadd.f32 2.0, %v3137_v54  ;;  %v3135_v59 = vadd.f32 2.0, %v6347_v55  ;;  %v3141_v2 = vmul.f32 %v3137_v54, %v3117_v30 }
 0x8ba   : > { %v3144_v60 = vadd.f32 2.0, %v3136_v56  ;;  %v3134_v61 = vadd.f32 2.0, %v6349_v57  ;;  %v3140_v4 = vmul.f32 %v3136_v56, %v3116_v32 }
 0x8bb   : > { %6350 = vrcp.f32 %v3145_v58  ;;  %v3139_v62 = vmul.f32 %v6347_v55, %v3135_v59 }
 0x8bc   : > { %6352 = vrcp.f32 %v3144_v60  ;;  %v3138_v63 = vmul.f32 %v6349_v57, %v3134_v61 }
 0x8bd   : > { %v3147_v0 = vadd.f32 2.0, %v3139_v62  ;;  %v3143_v8 = vmul.f32 %v3139_v62, %v3119_v39 }
 0x8be   : > { %v3146_v1 = vadd.f32 2.0, %v3138_v63  ;;  %v3142_v12 = vmul.f32 %v3138_v63, %v3118_v42 }
 0x8bf   : > { %6354 = vrcp.f32 %v3147_v0 }
 0x8c0   : > { %6356 = vrcp.f32 %v3146_v1 }
 0x8c5   : > { %v6351_v3 = vpop.eup %6350 }
 0x8c6   : > { %v6353_v5 = vpop.eup %6352  ;;  %v3153_v6 = vmul.f32 %v6351_v3, %v3141_v2 }
 0x8c7   : > { %v3152_v7 = vmul.f32 %v6353_v5, %v3140_v4 }
 0x8c9   : > { %v6355_v11 = vpop.eup %6354  ;;  %v6140_v13 = vpack.c.bf16 %v3153_v6, %v3152_v7 }
 0x8ca   : > { %v6357_v14 = vpop.eup %6356  ;;  %v3155_v15 = vmul.f32 %v6355_v11, %v3143_v8 }
 0x8cb   : > { %v3154_v16 = vmul.f32 %v6357_v14, %v3142_v12  ;;  %6141 = vmatprep.subr.bf16.mxu0 %v6140_v13  ;;  %v5144_v12 = vld [vmem:[%s7298_s10 + $0x80] sm:$0xff] }
 0x8cc   : > { %6143 = vmatpush3.bf16.msra.mxu0 %v6140_v13 }
 0x8cd   : > { %v6144_v17 = vpack.c.bf16 %v3155_v15, %v3154_v16 }
 0x8cf   : > { %6145 = vmatprep.subr.bf16.mxu0 %v6144_v17 }
 0x8d0   : > { %6147 = vmatpush3.bf16.msra.mxu0 %v6144_v17 }
 0x8d1   : > { %6149 = vmatprep.subr.bf16.mxu0 %v6896_v43 }
 0x8d3   : > { %5807 = vmatmul.mubr.msk.f32.vlgmr.msra.gmra.mrb[18].mxu0 %vm1174_vm4, %v3157_v19 }
 0x8d4   : > { %5809 = vmatprep.mubr.msk.f32.mxu0 %vm1174_vm4, %v3158_v21  ;;  %6151 = vmatpush3.bf16.msra.mxu0 %v6896_v43 }
 0x8d7   : > { %5810 = vmatmul.mubr.msk.f32.gmra.mrb[20].mxu0 %vm1174_vm4, %v3159_v22 }
 0x9a6   : > { %v5808_v24 = vpop.f32.mrb[18].mxu0 }
 0x9a7   : > { %v3258_v26 = vadd.f32 %v5808_v24, %v6976_v9  ;;  %v3238_v27 = vpop.f32.mrb[19].mxu0 }
 0x9a8   : > { %v3257_v28 = vadd.f32 %v3238_v27, %v6978_v10 }
 0x9a9   : > { %v7076_v29 = vadd.f32 %v3273_v23, %v3258_v26 }
 0x9aa   : > { %v7078_v30 = vadd.f32 %v3268_v25, %v3257_v28  ;;  %v5811_v31 = vpop.f32.mrb[20].mxu0 }
 0x9ab   : > { %v3290_v32 = vmin.f32 %v7076_v29, 20.0  ;;  %v3260_v33 = vadd.f32 %v5811_v31, %v6982_v18  ;;  %v3248_v34 = vpop.f32.mrb[21].mxu0  ;;  %v5145_v31 = vld [vmem:[%s7298_s10 + $0x88] sm:$0xff] }
 0x9ac   : > { %v3289_v36 = vmin.f32 %v7078_v30, 20.0  ;;  %v3259_v37 = vadd.f32 %v3248_v34, %v6984_v20 }
 0x9ad   : > { %v3295_v9 = vmul.f32 1.442695, %v3290_v32  ;;  %v7084_v39 = vadd.f32 %v3283_v35, %v3260_v33  ;;  %v5146_v33 = vld [vmem:[%s7298_s10 + $0x90] sm:$0xff] }
 0x9ae   : > { %v3293_v10 = vmul.f32 1.442695, %v3289_v36  ;;  %v7086_v40 = vadd.f32 %v3278_v38, %v3259_v37  ;;  %v5147_v36 = vld [vmem:[%s7298_s10 + $0x98] sm:$0xff]  ;;  %v5136_v38 = vld [vmem:[%s7298_s10 + $0x60] sm:$0xff] }
 0x9af   : > { %6358 = vpow2.f32 %v3295_v9  ;;  %v3292_v41 = vmin.f32 %v7084_v39, 20.0  ;;  %v5137_v9 = vld [vmem:[%s7298_s10 + $0x68] sm:$0xff] }
 0x9b0   : > { %6360 = vpow2.f32 %v3293_v10  ;;  %v3291_v42 = vmin.f32 %v7086_v40, 20.0  ;;  %v5138_v10 = vld [vmem:[%s7298_s10 + $0x70] sm:$0xff] }
 0x9b1   : > { %v3299_v18 = vmul.f32 1.442695, %v3292_v41  ;;  %v5139_v41 = vld [vmem:[%s7298_s10 + $0x78] sm:$0xff] }
 0x9b2   : > { %v3297_v44 = vmul.f32 1.442695, %v3291_v42  ;;  %v5160_v42 = vld [vmem:[%s7298_s10 + $0xa0] sm:$0xff] }
 0x9b3   : > { %6362 = vpow2.f32 %v3299_v18  ;;  %v5161_v18 = vld [vmem:[%s7298_s10 + $0xa8] sm:$0xff] }
 0x9b4   : > { %6364 = vpow2.f32 %v3297_v44  ;;  %v5162_v44 = vld [vmem:[%s7298_s10 + $0xb0] sm:$0xff] }
 0x9b9   : > { %v6359_v46 = vpop.eup %6358 }
 0x9ba   : > { %v6361_v47 = vpop.eup %6360  ;;  %v3302_v20 = vadd.f32 2.0, %v6359_v46 }
 0x9bb   : > { %v3301_v49 = vadd.f32 2.0, %v6361_v47 }
 0x9bc   : > { %v3306_v50 = vmul.f32 %v6359_v46, %v3302_v20  ;;  %v5163_v46 = vld [vmem:[%s7298_s10 + $0xb8] sm:$0xff]  ;;  %v3915_v20 = vpop.permute.xlu1 %3914 }
 0x9bd   : > { %v6363_v51 = vpop.eup %6362  ;;  %v3305_v52 = vmul.f32 %v6361_v47, %v3301_v49  ;;  %v5172_v47 = vld [vmem:[%s7300_s12 + $0x20] sm:$0xff]  ;;  %v3910_v49 = vpop.permute.xlu0 %3909 }
 0x9be   : > { %v6365_v53 = vpop.eup %6364  ;;  %v3314_v54 = vadd.f32 2.0, %v3306_v50  ;;  %v3304_v55 = vadd.f32 2.0, %v6363_v51  ;;  %v3310_v1 = vmul.f32 %v3306_v50, %v7076_v29 }
 0x9bf   : > { %v3313_v56 = vadd.f32 2.0, %v3305_v52  ;;  %v3303_v57 = vadd.f32 2.0, %v6365_v53  ;;  %v3309_v63 = vmul.f32 %v3305_v52, %v7078_v30 }
 0x9c0   : > { %6366 = vrcp.f32 %v3314_v54  ;;  %v3308_v58 = vmul.f32 %v6363_v51, %v3304_v55  ;;  %v3925_v55 = vpop.permute.xlu1 %3924 }
 0x9c1   : > { %6368 = vrcp.f32 %v3313_v56  ;;  %v3307_v59 = vmul.f32 %v6365_v53, %v3303_v57  ;;  %v3920_v57 = vpop.permute.xlu0 %3919 }
 0x9c2   : > { %v3316_v60 = vadd.f32 2.0, %v3308_v58  ;;  %v3312_v7 = vmul.f32 %v3308_v58, %v7084_v39 }
 0x9c3   : > { %v3315_v61 = vadd.f32 2.0, %v3307_v59  ;;  %v3311_v5 = vmul.f32 %v3307_v59, %v7086_v40 }
 0x9c4   : > { %6370 = vrcp.f32 %v3316_v60 }
 0x9c5   : > { %6372 = vrcp.f32 %v3315_v61 }
 0x9ca   : > { %v6367_v62 = vpop.eup %6366 }
 0x9cb   : > { %v6369_v0 = vpop.eup %6368  ;;  %v3322_v3 = vmul.f32 %v6367_v62, %v3310_v1 }
 0x9cc   : > { %v3321_v2 = vmul.f32 %v6369_v0, %v3309_v63 }
 0x9ce   : > { %v6371_v4 = vpop.eup %6370  ;;  %5816 = vmatprep.mubr.msk.f32.mxu0 %vm1341_vm5, %v3321_v2  ;;  %5826 = vmatprep.mubr.msk.f32.mxu1 %vm1341_vm5, %v3321_v2 }
 0x9cf   : > { %v6373_v6 = vpop.eup %6372  ;;  %5817 = vmatmul.mubr.msk.f32.vlgmr.msra.gmra.mrb[22].mxu0 %vm1341_vm5, %v3322_v3  ;;  %5827 = vmatmul.mubr.msk.f32.vlgmr.msra.gmra.mrb[28].mxu1 %vm1341_vm5, %v3322_v3  ;;  %v3324_v11 = vmul.f32 %v6371_v4, %v3312_v7 }
 0x9d0   : > { %v3323_v8 = vmul.f32 %v6373_v6, %v3311_v5  ;;  %6175 = vmatpush3.bf16.msra.mxu1 %v6913_v48 }
 0x9d2   : > { %5819 = vmatprep.mubr.msk.f32.mxu0 %vm1341_vm5, %v3323_v8  ;;  %5829 = vmatprep.mubr.msk.f32.mxu1 %vm1341_vm5, %v3323_v8 }
 0x9d3   : > { %5820 = vmatmul.mubr.msk.f32.gmra.mrb[24].mxu0 %vm1341_vm5, %v3324_v11  ;;  %5830 = vmatmul.mubr.msk.f32.gmra.mrb[30].mxu1 %vm1341_vm5, %v3324_v11 }
 0x9d4   : > { %5864 = vmatprep.mubr.msk.f32.mxu1 %vm1341_vm5, %v3321_v2  ;;  %5840 = vmatprep.mubr.msk.f32.mxu0 %vm1174_vm4, %v5144_v12 }
 0x9d7   : > { %5865 = vmatmul.mubr.msk.f32.vlgmr.msra.gmra.mrb[32].mxu1 %vm1341_vm5, %v3322_v3 }
 0x9d8   : > { %5867 = vmatprep.mubr.msk.f32.mxu1 %vm1341_vm5, %v3323_v8 }
 0x9db   : > { %5868 = vmatmul.mubr.msk.f32.gmra.mrb[34].mxu1 %vm1341_vm5, %v3324_v11 }
 0x9dc   : > { %5892 = vmatprep.mubr.msk.f32.mxu1 %vm1174_vm4, %v5172_v47 }
 0xaa2   : > { %v5818_v13 = vpop.f32.mrb[22].mxu0  ;;  %v5828_v14 = vpop.f32.mrb[28].mxu1 }
 0xaa3   : > { %v3403_v15 = vpop.f32.mrb[23].mxu0  ;;  %v3493_v16 = vpop.f32.mrb[29].mxu1 }
 0xaa4   : > { %v6164_v17 = vpack.c.bf16 %v5818_v13, %v3403_v15  ;;  %v6156_v19 = vpack.c.bf16 %v5828_v14, %v3493_v16 }
 0xaa6   : > { %v5821_v21 = vpop.f32.mrb[24].mxu0  ;;  %v5831_v22 = vpop.f32.mrb[30].mxu1  ;;  %6157 = vmatprep.subr.bf16.mxu0 %v6156_v19 }
 0xaa7   : > { %v3413_v23 = vpop.f32.mrb[25].mxu0  ;;  %v3503_v24 = vpop.f32.mrb[31].mxu1  ;;  %6159 = vmatpush3.bf16.msra.mxu0 %v6156_v19 }
 0xaa8   : > { %v6168_v25 = vpack.c.bf16 %v5821_v21, %v3413_v23  ;;  %v6160_v26 = vpack.c.bf16 %v5831_v22, %v3503_v24 }
 0xaaa   : > { %6161 = vmatprep.subr.bf16.mxu0 %v6160_v26  ;;  %v5866_v27 = vpop.f32.mrb[32].mxu1 }
 0xaab   : > { %6163 = vmatpush3.bf16.msra.mxu0 %v6160_v26  ;;  %v3777_v28 = vpop.f32.mrb[33].mxu1 }
 0xaac   : > { %v6176_v32 = vpack.c.bf16 %v5866_v27, %v3777_v28  ;;  %6165 = vmatprep.subr.bf16.mxu0 %v6164_v17 }
 0xaae   : > { %5841 = vmatmul.mubr.msk.f32.vlgmr.msra.gmra.mrb[26].mxu0 %vm1174_vm4, %v5145_v31  ;;  %v5869_v34 = vpop.f32.mrb[34].mxu1 }
 0xaaf   : > { %6167 = vmatpush3.bf16.msra.mxu0 %v6164_v17  ;;  %v3787_v35 = vpop.f32.mrb[35].mxu1  ;;  %5843 = vmatprep.mubr.msk.f32.mxu0 %vm1174_vm4, %v5146_v33 }
 0xab0   : > { %v6180_v37 = vpack.c.bf16 %v5869_v34, %v3787_v35  ;;  %6169 = vmatprep.subr.bf16.mxu0 %v6168_v25 }
 0xab2   : > { %5844 = vmatmul.mubr.msk.f32.gmra.mrb[28].mxu0 %vm1174_vm4, %v5147_v36 }
 0xab3   : > { %6171 = vmatpush3.bf16.msra.mxu0 %v6168_v25  ;;  %5854 = vmatprep.mubr.msk.f32.mxu0 %vm1174_vm4, %v5136_v38 }
 0xab4   : > { %6177 = vmatprep.subr.bf16.mxu0 %v6176_v32 }
 0xab6   : > { %5855 = vmatmul.mubr.msk.f32.vlgmr.msra.gmra.mrb[26].mxu0 %vm1174_vm4, %v5137_v9  ;;  %v5173_v9 = vld [vmem:[%s7300_s12 + $0x28] sm:$0xff] }
 0xab7   : > { %6179 = vmatpush3.bf16.msra.mxu0 %v6176_v32  ;;  %5857 = vmatprep.mubr.msk.f32.mxu0 %vm1174_vm4, %v5138_v10  ;;  %v5174_v10 = vld [vmem:[%s7300_s12 + $0x30] sm:$0xff] }
 0xab8   : > { %6181 = vmatprep.subr.bf16.mxu0 %v6180_v37 }
 0xaba   : > { %5858 = vmatmul.mubr.msk.f32.gmra.mrb[28].mxu0 %vm1174_vm4, %v5139_v41  ;;  %v5175_v41 = vld [vmem:[%s7300_s12 + $0x38] sm:$0xff] }
 0xabb   : > { %6183 = vmatpush3.bf16.msra.mxu0 %v6180_v37  ;;  %5878 = vmatprep.mubr.msk.f32.mxu0 %vm1174_vm4, %v5160_v42  ;;  %v4086_v42 = vpop.permute.xlu1 %4085 }
 0xabc   : > { %6197 = vmatprep.subr.bf16.mxu0 %v6901_v45 }
 0xabe   : > { %5879 = vmatmul.mubr.msk.f32.vlgmr.msra.gmra.mrb[26].mxu0 %vm1174_vm4, %v5161_v18 }
 0xabf   : > { %5881 = vmatprep.mubr.msk.f32.mxu0 %vm1174_vm4, %v5162_v44  ;;  %6199 = vmatpush3.bf16.msra.mxu0 %v6901_v45  ;;  %v4081_v44 = vpop.permute.xlu0 %4080 }
 0xac0   : > { %6217 = vmatprep.subr.bf16.mxu0 %v6913_v48 }
 0xac2   : > { %5882 = vmatmul.mubr.msk.f32.gmra.mrb[28].mxu0 %vm1174_vm4, %v5163_v46 }
 0xb91   : > { %v5880_v50 = vpop.f32.mrb[26].mxu0 }
 0xb92   : > { %v3928_v51 = vadd.f32 %v5880_v50, %v3915_v20  ;;  %v3879_v52 = vpop.f32.mrb[27].mxu0 }
 0xb93   : > { %v3927_v53 = vadd.f32 %v3910_v49, %v3879_v52 }
 0xb94   : > { %v3932_v54 = vmin.f32 %v3928_v51, 20.0 }
 0xb95   : > { %v3931_v56 = vmin.f32 %v3927_v53, 20.0  ;;  %v5883_v45 = vpop.f32.mrb[28].mxu0 }
 0xb96   : > { %v3937_v58 = vmul.f32 1.442695, %v3932_v54  ;;  %v3930_v59 = vadd.f32 %v5883_v45, %v3925_v55  ;;  %v3889_v60 = vpop.f32.mrb[29].mxu0  ;;  %v4096_v54 = vpop.permute.xlu1 %4095 }
 0xb97   : > { %v3935_v61 = vmul.f32 1.442695, %v3931_v56  ;;  %v3929_v62 = vadd.f32 %v3920_v57, %v3889_v60  ;;  %v4091_v45 = vpop.permute.xlu0 %4090 }
 0xb98   : > { %6374 = vpow2.f32 %v3937_v58  ;;  %v3934_v63 = vmin.f32 %v3930_v59, 20.0 }
 0xb99   : > { %6376 = vpow2.f32 %v3935_v61  ;;  %v3933_v0 = vmin.f32 %v3929_v62, 20.0 }
 0xb9a   : > { %v3941_v1 = vmul.f32 1.442695, %v3934_v63 }
 0xb9b   : > { %v3939_v2 = vmul.f32 1.442695, %v3933_v0 }
 0xb9c   : > { %6378 = vpow2.f32 %v3941_v1 }
 0xb9d   : > { %6380 = vpow2.f32 %v3939_v2 }
 0xba2   : > { %v6375_v3 = vpop.eup %6374 }
 0xba3   : > { %v6377_v4 = vpop.eup %6376  ;;  %v3944_v5 = vadd.f32 2.0, %v6375_v3 }
 0xba4   : > { %v3943_v6 = vadd.f32 2.0, %v6377_v4 }
 0xba5   : > { %v3948_v7 = vmul.f32 %v6375_v3, %v3944_v5 }
 0xba6   : > { %v6379_v8 = vpop.eup %6378  ;;  %v3947_v11 = vmul.f32 %v6377_v4, %v3943_v6 }
 0xba7   : > { %v6381_v12 = vpop.eup %6380  ;;  %v3956_v13 = vadd.f32 2.0, %v3948_v7  ;;  %v3946_v14 = vadd.f32 2.0, %v6379_v8  ;;  %v3952_v23 = vmul.f32 %v3948_v7, %v3928_v51 }
 0xba8   : > { %v3955_v15 = vadd.f32 2.0, %v3947_v11  ;;  %v3945_v16 = vadd.f32 2.0, %v6381_v12  ;;  %v3951_v25 = vmul.f32 %v3947_v11, %v3927_v53 }
 0xba9   : > { %6382 = vrcp.f32 %v3956_v13  ;;  %v3950_v17 = vmul.f32 %v6379_v8, %v3946_v14 }
 0xbaa   : > { %6384 = vrcp.f32 %v3955_v15  ;;  %v3949_v19 = vmul.f32 %v6381_v12, %v3945_v16 }
 0xbab   : > { %v3958_v21 = vadd.f32 2.0, %v3950_v17  ;;  %v3954_v31 = vmul.f32 %v3950_v17, %v3930_v59 }
 0xbac   : > { %v3957_v22 = vadd.f32 2.0, %v3949_v19  ;;  %v3953_v33 = vmul.f32 %v3949_v19, %v3929_v62 }
 0xbad   : > { %6386 = vrcp.f32 %v3958_v21 }
 0xbae   : > { %6388 = vrcp.f32 %v3957_v22 }
 0xbb3   : > { %v6383_v24 = vpop.eup %6382 }
 0xbb4   : > { %v6385_v26 = vpop.eup %6384  ;;  %v3964_v27 = vmul.f32 %v6383_v24, %v3952_v23 }
 0xbb5   : > { %v3963_v28 = vmul.f32 %v6385_v26, %v3951_v25 }
 0xbb7   : > { %v6387_v32 = vpop.eup %6386  ;;  %v6184_v34 = vpack.c.bf16 %v3964_v27, %v3963_v28 }
 0xbb8   : > { %v6389_v35 = vpop.eup %6388  ;;  %v3966_v36 = vmul.f32 %v6387_v32, %v3954_v31 }
 0xbb9   : > { %v3965_v37 = vmul.f32 %v6389_v35, %v3953_v33  ;;  %6185 = vmatprep.subr.bf16.mxu1 %v6184_v34 }
 0xbba   : > { %6187 = vmatpush3.bf16.msra.mxu1 %v6184_v34 }
 0xbbb   : > { %v6188_v38 = vpack.c.bf16 %v3966_v36, %v3965_v37 }
 0xbbd   : > { %6189 = vmatprep.subr.bf16.mxu1 %v6188_v38 }
 0xbbe   : > { %6191 = vmatpush3.bf16.msra.mxu1 %v6188_v38 }
 0xbbf   : > { %6193 = vmatprep.subr.bf16.mxu1 %v6896_v43 }
 0xbc1   : > { %5893 = vmatmul.mubr.msk.f32.vlgmr.msra.gmra.mrb[36].mxu1 %vm1174_vm4, %v5173_v9 }
 0xbc2   : > { %5895 = vmatprep.mubr.msk.f32.mxu1 %vm1174_vm4, %v5174_v10  ;;  %6195 = vmatpush3.bf16.msra.mxu1 %v6896_v43 }
 0xbc5   : > { %5896 = vmatmul.mubr.msk.f32.gmra.mrb[38].mxu1 %vm1174_vm4, %v5175_v41 }
 0xc94   : > { %v5894_v18 = vpop.f32.mrb[36].mxu1 }
 0xc95   : > { %v4070_v46 = vadd.f32 %v5894_v18, %v7076_v29  ;;  %v4050_v47 = vpop.f32.mrb[37].mxu1 }
 0xc96   : > { %v4069_v20 = vadd.f32 %v4050_v47, %v7078_v30 }
 0xc97   : > { %v7178_v49 = vadd.f32 %v4086_v42, %v4070_v46  ;;  %v5197_v46 = vld [vmem:[%s7298_s10 + $0xe8] sm:$0xff] }
 0xc98   : > { %v7180_v50 = vadd.f32 %v4081_v44, %v4069_v20  ;;  %v5897_v51 = vpop.f32.mrb[38].mxu1  ;;  %v5198_v20 = vld [vmem:[%s7298_s10 + $0xf0] sm:$0xff] }
 0xc99   : > { %v4103_v52 = vmin.f32 %v7178_v49, 20.0  ;;  %v4072_v53 = vadd.f32 %v5897_v51, %v7084_v39  ;;  %v4060_v43 = vpop.f32.mrb[39].mxu1 }
 0xc9a   : > { %v4102_v55 = vmin.f32 %v7180_v50, 20.0  ;;  %v4071_v56 = vadd.f32 %v4060_v43, %v7086_v40 }
 0xc9b   : > { %v4108_v29 = vmul.f32 1.442695, %v4103_v52  ;;  %v7186_v57 = vadd.f32 %v4096_v54, %v4072_v53  ;;  %v5199_v53 = vld [vmem:[%s7298_s10 + $0xf8] sm:$0xff]  ;;  %v5188_v54 = vld [vmem:[%s7298_s10 + $0xc0] sm:$0xff] }
 0xc9c   : > { %v4106_v30 = vmul.f32 1.442695, %v4102_v55  ;;  %v7188_v58 = vadd.f32 %v4091_v45, %v4071_v56  ;;  %v5189_v55 = vld [vmem:[%s7298_s10 + $0xc8] sm:$0xff]  ;;  %v5190_v56 = vld [vmem:[%s7298_s10 + $0xd0] sm:$0xff]  ;;  %v5191_v45 = vld [vmem:[%s7298_s10 + $0xd8] sm:$0xff] }
 0xc9d   : > { %6390 = vpow2.f32 %v4108_v29  ;;  %v4105_v59 = vmin.f32 %v7186_v57, 20.0  ;;  %v5212_v29 = vld [vmem:[%s7298_s10 + $0x100] sm:$0xff] }
 0xc9e   : > { %6392 = vpow2.f32 %v4106_v30  ;;  %v4104_v60 = vmin.f32 %v7188_v58, 20.0  ;;  %v5213_v30 = vld [vmem:[%s7298_s10 + $0x108] sm:$0xff] }
 0xc9f   : > { %v4112_v39 = vmul.f32 1.442695, %v4105_v59  ;;  %v5214_v59 = vld [vmem:[%s7298_s10 + $0x110] sm:$0xff] }
 0xca0   : > { %v4110_v61 = vmul.f32 1.442695, %v4104_v60  ;;  %v5215_v60 = vld [vmem:[%s7298_s10 + $0x118] sm:$0xff] }
 0xca1   : > { %6394 = vpow2.f32 %v4112_v39  ;;  %v5224_v39 = vld [vmem:[%s7300_s12 + $0x40] sm:$0xff] }
 0xca2   : > { %6396 = vpow2.f32 %v4110_v61  ;;  %v4728_v61 = vpop.permute.xlu1 %4727 }
 0xca7   : > { %v6391_v62 = vpop.eup %6390 }
 0xca8   : > { %v6393_v63 = vpop.eup %6392  ;;  %v4115_v40 = vadd.f32 2.0, %v6391_v62 }
 0xca9   : > { %v4114_v0 = vadd.f32 2.0, %v6393_v63 }
 0xcaa   : > { %v4119_v1 = vmul.f32 %v6391_v62, %v4115_v40  ;;  %v4723_v62 = vpop.permute.xlu0 %4722 }
 0xcab   : > { %v6395_v2 = vpop.eup %6394  ;;  %v4118_v3 = vmul.f32 %v6393_v63, %v4114_v0 }
 0xcac   : > { %v6397_v4 = vpop.eup %6396  ;;  %v4127_v5 = vadd.f32 2.0, %v4119_v1  ;;  %v4117_v6 = vadd.f32 2.0, %v6395_v2  ;;  %v4123_v19 = vmul.f32 %v4119_v1, %v7178_v49 }
 0xcad   : > { %v4126_v7 = vadd.f32 2.0, %v4118_v3  ;;  %v4116_v8 = vadd.f32 2.0, %v6397_v4  ;;  %v4122_v16 = vmul.f32 %v4118_v3, %v7180_v50  ;;  %v4738_v3 = vpop.permute.xlu1 %4737 }
 0xcae   : > { %6398 = vrcp.f32 %v4127_v5  ;;  %v4121_v11 = vmul.f32 %v6395_v2, %v4117_v6  ;;  %v4733_v6 = vpop.permute.xlu0 %4732 }
 0xcaf   : > { %6400 = vrcp.f32 %v4126_v7  ;;  %v4120_v12 = vmul.f32 %v6397_v4, %v4116_v8 }
 0xcb0   : > { %v4129_v13 = vadd.f32 2.0, %v4121_v11  ;;  %v4125_v26 = vmul.f32 %v4121_v11, %v7186_v57 }
 0xcb1   : > { %v4128_v14 = vadd.f32 2.0, %v4120_v12  ;;  %v4124_v24 = vmul.f32 %v4120_v12, %v7188_v58 }
 0xcb2   : > { %6402 = vrcp.f32 %v4129_v13 }
 0xcb3   : > { %6404 = vrcp.f32 %v4128_v14 }
 0xcb8   : > { %v6399_v15 = vpop.eup %6398 }
 0xcb9   : > { %v6401_v17 = vpop.eup %6400  ;;  %v4135_v22 = vmul.f32 %v6399_v15, %v4123_v19 }
 0xcba   : > { %v4134_v21 = vmul.f32 %v6401_v17, %v4122_v16 }
 0xcbc   : > { %v6403_v23 = vpop.eup %6402  ;;  %5902 = vmatprep.mubr.msk.f32.mxu1 %vm1341_vm5, %v4134_v21  ;;  %5912 = vmatprep.mubr.msk.f32.mxu0 %vm1341_vm5, %v4134_v21 }
 0xcbd   : > { %v6405_v25 = vpop.eup %6404  ;;  %5903 = vmatmul.mubr.msk.f32.vlgmr.msra.gmra.mrb[40].mxu1 %vm1341_vm5, %v4135_v22  ;;  %5913 = vmatmul.mubr.msk.f32.vlgmr.msra.gmra.mrb[30].mxu0 %vm1341_vm5, %v4135_v22  ;;  %v4137_v28 = vmul.f32 %v6403_v23, %v4125_v26 }
 0xcbe   : > { %v4136_v27 = vmul.f32 %v6405_v25, %v4124_v24  ;;  %6219 = vmatpush3.bf16.msra.mxu0 %v6913_v48  ;;  %v5196_v48 = vld [vmem:[%s7298_s10 + $0xe0] sm:$0xff] }
 0xcc0   : > { %5905 = vmatprep.mubr.msk.f32.mxu1 %vm1341_vm5, %v4136_v27  ;;  %5915 = vmatprep.mubr.msk.f32.mxu0 %vm1341_vm5, %v4136_v27 }
 0xcc1   : > { %5906 = vmatmul.mubr.msk.f32.gmra.mrb[42].mxu1 %vm1341_vm5, %v4137_v28  ;;  %5916 = vmatmul.mubr.msk.f32.gmra.mrb[32].mxu0 %vm1341_vm5, %v4137_v28 }
 0xcc2   : > { %5950 = vmatprep.mubr.msk.f32.mxu0 %vm1341_vm5, %v4134_v21  ;;  %5926 = vmatprep.mubr.msk.f32.mxu1 %vm1174_vm4, %v5196_v48 }
 0xcc5   : > { %5951 = vmatmul.mubr.msk.f32.vlgmr.msra.gmra.mrb[34].mxu0 %vm1341_vm5, %v4135_v22 }
 0xcc6   : > { %5953 = vmatprep.mubr.msk.f32.mxu0 %vm1341_vm5, %v4136_v27 }
 0xcc9   : > { %5954 = vmatmul.mubr.msk.f32.gmra.mrb[36].mxu0 %vm1341_vm5, %v4137_v28 }
 0xcca   : > { %5978 = vmatprep.mubr.msk.f32.mxu0 %vm1174_vm4, %v5224_v39 }
 0xd90   : > { %v5904_v31 = vpop.f32.mrb[40].mxu1  ;;  %v5914_v32 = vpop.f32.mrb[30].mxu0 }
 0xd91   : > { %v4216_v33 = vpop.f32.mrb[41].mxu1  ;;  %v4306_v34 = vpop.f32.mrb[31].mxu0 }
 0xd92   : > { %v6208_v35 = vpack.c.bf16 %v5904_v31, %v4216_v33  ;;  %v6200_v36 = vpack.c.bf16 %v5914_v32, %v4306_v34 }
 0xd94   : > { %v5907_v37 = vpop.f32.mrb[42].mxu1  ;;  %v5917_v38 = vpop.f32.mrb[32].mxu0  ;;  %6201 = vmatprep.subr.bf16.mxu1 %v6200_v36 }
 0xd95   : > { %v4226_v9 = vpop.f32.mrb[43].mxu1  ;;  %v4316_v10 = vpop.f32.mrb[33].mxu0  ;;  %6203 = vmatpush3.bf16.msra.mxu1 %v6200_v36 }
 0xd96   : > { %v6212_v41 = vpack.c.bf16 %v5907_v37, %v4226_v9  ;;  %v6204_v42 = vpack.c.bf16 %v5917_v38, %v4316_v10 }
 0xd98   : > { %6205 = vmatprep.subr.bf16.mxu1 %v6204_v42  ;;  %v5952_v18 = vpop.f32.mrb[34].mxu0 }
 0xd99   : > { %6207 = vmatpush3.bf16.msra.mxu1 %v6204_v42  ;;  %v4590_v44 = vpop.f32.mrb[35].mxu0 }
 0xd9a   : > { %v6220_v47 = vpack.c.bf16 %v5952_v18, %v4590_v44  ;;  %6209 = vmatprep.subr.bf16.mxu1 %v6208_v35 }
 0xd9c   : > { %5927 = vmatmul.mubr.msk.f32.vlgmr.msra.gmra.mrb[44].mxu1 %vm1174_vm4, %v5197_v46  ;;  %v5955_v51 = vpop.f32.mrb[36].mxu0 }
 0xd9d   : > { %6211 = vmatpush3.bf16.msra.mxu1 %v6208_v35  ;;  %v4600_v52 = vpop.f32.mrb[37].mxu0  ;;  %5929 = vmatprep.mubr.msk.f32.mxu1 %vm1174_vm4, %v5198_v20 }
 0xd9e   : > { %v6224_v43 = vpack.c.bf16 %v5955_v51, %v4600_v52  ;;  %6213 = vmatprep.subr.bf16.mxu1 %v6212_v41 }
 0xda0   : > { %5930 = vmatmul.mubr.msk.f32.gmra.mrb[46].mxu1 %vm1174_vm4, %v5199_v53 }
 0xda1   : > { %6215 = vmatpush3.bf16.msra.mxu1 %v6212_v41  ;;  %5940 = vmatprep.mubr.msk.f32.mxu1 %vm1174_vm4, %v5188_v54  ;;  %v5226_v54 = vld [vmem:[%s7300_s12 + $0x50] sm:$0xff] }
 0xda2   : > { %6221 = vmatprep.subr.bf16.mxu1 %v6220_v47 }
 0xda4   : > { %5941 = vmatmul.mubr.msk.f32.vlgmr.msra.gmra.mrb[44].mxu1 %vm1174_vm4, %v5189_v55  ;;  %v5227_v55 = vld [vmem:[%s7300_s12 + $0x58] sm:$0xff] }
 0xda5   : > { %6223 = vmatpush3.bf16.msra.mxu1 %v6220_v47  ;;  %5943 = vmatprep.mubr.msk.f32.mxu1 %vm1174_vm4, %v5190_v56  ;;  %v4899_v56 = vpop.permute.xlu1 %4898 }
 0xda6   : > { %6225 = vmatprep.subr.bf16.mxu1 %v6224_v43 }
 0xda8   : > { %5944 = vmatmul.mubr.msk.f32.gmra.mrb[46].mxu1 %vm1174_vm4, %v5191_v45 }
 0xda9   : > { %6227 = vmatpush3.bf16.msra.mxu1 %v6224_v43  ;;  %5964 = vmatprep.mubr.msk.f32.mxu1 %vm1174_vm4, %v5212_v29  ;;  %v5225_v43 = vld [vmem:[%s7300_s12 + $0x48] sm:$0xff]  ;;  %v4894_v29 = vpop.permute.xlu0 %4893 }
 0xdac   : > { %5965 = vmatmul.mubr.msk.f32.vlgmr.msra.gmra.mrb[44].mxu1 %vm1174_vm4, %v5213_v30 }
 0xdad   : > { %5967 = vmatprep.mubr.msk.f32.mxu1 %vm1174_vm4, %v5214_v59 }
 0xdb0   : > { %5968 = vmatmul.mubr.msk.f32.gmra.mrb[46].mxu1 %vm1174_vm4, %v5215_v60 }
 0xe7f   : > { %v5966_v63 = vpop.f32.mrb[44].mxu1 }
 0xe80   : > { %v4741_v40 = vadd.f32 %v5966_v63, %v4728_v61  ;;  %v4692_v0 = vpop.f32.mrb[45].mxu1 }
 0xe81   : > { %v4740_v1 = vadd.f32 %v4723_v62, %v4692_v0 }
 0xe82   : > { %v4745_v2 = vmin.f32 %v4741_v40, 20.0 }
 0xe83   : > { %v4744_v4 = vmin.f32 %v4740_v1, 20.0  ;;  %v5969_v5 = vpop.f32.mrb[46].mxu1 }
 0xe84   : > { %v4750_v7 = vmul.f32 1.442695, %v4745_v2  ;;  %v4743_v8 = vadd.f32 %v5969_v5, %v4738_v3  ;;  %v4702_v11 = vpop.f32.mrb[47].mxu1 }
 0xe85   : > { %v4748_v12 = vmul.f32 1.442695, %v4744_v4  ;;  %v4742_v13 = vadd.f32 %v4733_v6, %v4702_v11  ;;  %v4904_v4 = vpop.permute.xlu0 %4903 }
 0xe86   : > { %6406 = vpow2.f32 %v4750_v7  ;;  %v4747_v14 = vmin.f32 %v4743_v8, 20.0 }
 0xe87   : > { %6408 = vpow2.f32 %v4748_v12  ;;  %v4746_v15 = vmin.f32 %v4742_v13, 20.0 }
 0xe88   : > { %v4754_v16 = vmul.f32 1.442695, %v4747_v14 }
 0xe89   : > { %v4752_v17 = vmul.f32 1.442695, %v4746_v15 }
 0xe8a   : > { %6410 = vpow2.f32 %v4754_v16 }
 0xe8b   : > { %6412 = vpow2.f32 %v4752_v17 }
 0xe90   : > { %v6407_v19 = vpop.eup %6406 }
 0xe91   : > { %v6409_v21 = vpop.eup %6408  ;;  %v4757_v22 = vadd.f32 2.0, %v6407_v19 }
 0xe92   : > { %v4756_v23 = vadd.f32 2.0, %v6409_v21 }
 0xe93   : > { %v4761_v24 = vmul.f32 %v6407_v19, %v4757_v22 }
 0xe94   : > { %v6411_v25 = vpop.eup %6410  ;;  %v4760_v26 = vmul.f32 %v6409_v21, %v4756_v23 }
 0xe95   : > { %v6413_v27 = vpop.eup %6412  ;;  %v4769_v28 = vadd.f32 2.0, %v4761_v24  ;;  %v4759_v48 = vadd.f32 2.0, %v6411_v25  ;;  %v4765_v37 = vmul.f32 %v4761_v24, %v4741_v40 }
 0xe96   : > { %v4768_v31 = vadd.f32 2.0, %v4760_v26  ;;  %v4758_v32 = vadd.f32 2.0, %v6413_v27  ;;  %v4764_v9 = vmul.f32 %v4760_v26, %v4740_v1  ;;  %v4909_v1 = vpop.permute.xlu1 %4908 }
 0xe97   : > { %6414 = vrcp.f32 %v4769_v28  ;;  %v4763_v33 = vmul.f32 %v6411_v25, %v4759_v48 }
 0xe98   : > { %6416 = vrcp.f32 %v4768_v31  ;;  %v4762_v34 = vmul.f32 %v6413_v27, %v4758_v32 }
 0xe99   : > { %v4771_v35 = vadd.f32 2.0, %v4763_v33  ;;  %v4767_v18 = vmul.f32 %v4763_v33, %v4743_v8 }
 0xe9a   : > { %v4770_v36 = vadd.f32 2.0, %v4762_v34  ;;  %v4766_v46 = vmul.f32 %v4762_v34, %v4742_v13 }
 0xe9b   : > { %6418 = vrcp.f32 %v4771_v35 }
 0xe9c   : > { %6420 = vrcp.f32 %v4770_v36 }
 0xea1   : > { %v6415_v38 = vpop.eup %6414 }
 0xea2   : > { %v6417_v10 = vpop.eup %6416  ;;  %v4777_v41 = vmul.f32 %v6415_v38, %v4765_v37 }
 0xea3   : > { %v4776_v42 = vmul.f32 %v6417_v10, %v4764_v9 }
 0xea5   : > { %v6419_v44 = vpop.eup %6418  ;;  %v6228_v47 = vpack.c.bf16 %v4777_v41, %v4776_v42 }
 0xea6   : > { %v6421_v20 = vpop.eup %6420  ;;  %v4779_v51 = vmul.f32 %v6419_v44, %v4767_v18 }
 0xea7   : > { %v4778_v52 = vmul.f32 %v6421_v20, %v4766_v46  ;;  %6229 = vmatprep.subr.bf16.mxu0 %v6228_v47 }
 0xea8   : > { %6231 = vmatpush3.bf16.msra.mxu0 %v6228_v47 }
 0xea9   : > { %v6232_v53 = vpack.c.bf16 %v4779_v51, %v4778_v52 }
 0xeab   : > { %6233 = vmatprep.subr.bf16.mxu0 %v6232_v53 }
 0xeac   : > { %6235 = vmatpush3.bf16.msra.mxu0 %v6232_v53 }
 0xeaf   : > { %5979 = vmatmul.mubr.msk.f32.vlgmr.msra.gmra.mrb[38].mxu0 %vm1174_vm4, %v5225_v43 }
 0xeb0   : > { %5981 = vmatprep.mubr.msk.f32.mxu0 %vm1174_vm4, %v5226_v54 }
 0xeb3   : > { %5982 = vmatmul.mubr.msk.f32.gmra.mrb[40].mxu0 %vm1174_vm4, %v5227_v55 }
 0xf82   : > { %v5980_v45 = vpop.f32.mrb[38].mxu0 }
 0xf83   : > { %v4883_v30 = vadd.f32 %v5980_v45, %v7178_v49  ;;  %v4863_v59 = vpop.f32.mrb[39].mxu0 }
 0xf84   : > { %v4882_v60 = vadd.f32 %v4863_v59, %v7180_v50 }
 0xf85   : > { %v4912_v39 = vadd.f32 %v4899_v56, %v4883_v30 }
 0xf86   : > { %v4911_v61 = vadd.f32 %v4894_v29, %v4882_v60  ;;  %v5983_v62 = vpop.f32.mrb[40].mxu0 }
 0xf87   : > { %v4916_v63 = vmax.f32 %v4912_v39, 0.0  ;;  %v4885_v40 = vadd.f32 %v5983_v62, %v7186_v57  ;;  %v4873_v0 = vpop.f32.mrb[41].mxu0 }
 0xf88   : > { %v4915_v2 = vmax.f32 %v4911_v61, 0.0  ;;  %v4884_v3 = vadd.f32 %v4873_v0, %v7188_v58 }
 0xf89   : > { %4920 = vst.msk [vmem:[%s464_s25 + $0x8] sm:$0xff] %vm1341_vm5, %v4916_v63  ;;  %v4914_v49 = vadd.f32 %v4909_v1, %v4885_v40 }
 0xf8a   : > { %4919 = vst.msk [vmem:[%s464_s25] sm:$0xff] %vm1341_vm5, %v4915_v2  ;;  %v4913_v50 = vadd.f32 %v4904_v4, %v4884_v3 }
 0xf8b   : > { %v4918_v5 = vmax.f32 %v4914_v49, 0.0 }
 0xf8c   : > { %v4917_v6 = vmax.f32 %v4913_v50, 0.0 }
 0xf8d   : > { %4922 = vst.msk [vmem:[%s464_s25 + $0x18] sm:$0xff] %vm1341_vm5, %v4918_v5 }
 0xf8e   : > { %4921 = vst.msk [vmem:[%s464_s25 + $0x10] sm:$0xff] %vm1341_vm5, %v4917_v6 }
 0xf8f PF: > { %s24_s29 = sadd.s32 1, %s6428_s29  }
 0xf90   : > { %p21_p4 = scmp.ge.s32.totalorder %s24_s29, 4  }
 0xf92   :  { %23 = sbr.rel (!%p21_p4) target bundleno = 1 (0x1), region = 136 }

</bundles_post_ra>
